<compile_context>
chip_gen: v6e
topology: v6e:2x2x1
jax: 0.10.0
libtpu: 0.0.40
codegen_flags: <defaults>
</compile_context>

<pallas_src>
import numpy as np

import jax
import jax.numpy as jnp
from jax.experimental import pallas as pl
from jax.experimental.pallas import tpu as pltpu

# ----------------------------- model config (small demo shapes) --------------
B = 2                  # batch
MAX_SENT_LEN = 16      # L
EMBEDDING_DIM = 32     # E
VOCAB_SIZE = 50        # V
NUM_FILTERS = 16       # N (per filter size)
FILTER_SIZES = (3, 4, 5)
NUM_CLASSES = 2        # C

LANE = 128
SUBLANE = 8

F_PAD = 8                                   # conv taps padded 5 -> 8 (K = 256)
L_OUT_PAD = 16                              # conv windows padded 14 -> 16
L_X = ((L_OUT_PAD + F_PAD - 1 + SUBLANE - 1) // SUBLANE) * SUBLANE   # 23 -> 24
K_PAD = F_PAD * EMBEDDING_DIM               # 256 contraction depth (lane-exact)
V_PAD = LANE                                # vocab 50 -> 128 (one-hot lanes)
N_PAD = LANE                                # 3*16 = 48 filters -> 128 lanes
C_PAD = LANE                                # 2 classes -> 128 lanes
PAD_ID = VOCAB_SIZE                         # padding token -> zero embedding
NEG_INF = -1e30

# Demo tile.  Realistic settings: v5e 128-192 (f32), v6e/v7x 256-512 (bf16);
# always a multiple of 8 so every batch reshape stays a free re-view.
BATCH_TILE = 8

# f32 keeps the exact reference check; use jnp.bfloat16 on v6e/v7x for ~2x MXU
# throughput and half the HBM/DMA bytes (accumulation stays f32 below).
COMPUTE_DTYPE = jnp.float32


# ----------------------------- Pallas kernel ---------------------------------
def _textcnn_kernel(tok_ref, emb_ref, wconv_ref, bconv_ref, mask_ref,
                    wfc_ref, bfc_ref, out_ref, patch_ref):
  """Embed + conv(x3 filter sizes) + ReLU + max-pool + FC + softmax in VMEM.

  tok_ref   : (TB*L_X, 1) int32   token ids (PAD_ID rows embed to zero)
  emb_ref   : (V_PAD, E)          zero-padded embedding table
  wconv_ref : (K_PAD, N_PAD)      tap-padded, filter-size-stacked conv weight
  bconv_ref : (1, N_PAD)          conv bias (0 in padded lanes)
  mask_ref  : (L_OUT_PAD, N_PAD)  1.0 valid window / 0.0 invalid (post-ReLU)
  wfc_ref   : (N_PAD, C_PAD)      fc weight (PyTorch flatten order folded in)
  bfc_ref   : (1, C_PAD)          fc bias (-1e30 in padded class lanes)
  out_ref   : (TB, C_PAD)         lane-dense softmax slab (cols >= C are 0)
  patch_ref : (TB, L_OUT_PAD, K_PAD) VMEM scratch for im2col patches
  """
  tb = out_ref.shape[0]
  rows = tok_ref.shape[0]                                   # TB * L_X

  # --- Embedding gather as a one-hot MXU matmul (layout-safe, MXU-friendly) --
  tok = tok_ref[...]                                        # (TB*L_X, 1)
  iota = jax.lax.broadcasted_iota(jnp.int32, (rows, V_PAD), 1)
  onehot = jnp.where(tok == iota, 1.0, 0.0).astype(COMPUTE_DTYPE)
  x = jnp.dot(onehot, emb_ref[...],
              preferred_element_type=jnp.float32)           # (TB*L_X, E)
  x = x.astype(COMPUTE_DTYPE).reshape(tb, L_X, EMBEDDING_DIM)

  # --- im2col into VMEM scratch: 8 strided stores, K = 256 lane-exact -------
  for k in range(F_PAD):
    patch_ref[:, :, k * EMBEDDING_DIM:(k + 1) * EMBEDDING_DIM] = (
        x[:, k:k + L_OUT_PAD, :])

  patches = patch_ref[...].reshape(tb * L_OUT_PAD, K_PAD)   # free re-view

  # --- One fused conv matmul for all 3 filter sizes, f32 accumulation -------
  conv = jnp.dot(patches, wconv_ref[...],
                 preferred_element_type=jnp.float32)        # (TB*16, N_PAD)
  conv = jnp.maximum(conv + bconv_ref[...], 0.0)            # bias + ReLU
  conv = conv.reshape(tb, L_OUT_PAD, N_PAD) * mask_ref[...] # zero bad windows
  pooled = jnp.max(conv, axis=1)                            # (TB, N_PAD)

  # --- FC + lane-dense softmax (padded class lanes carry -1e30 bias) --------
  logits = jnp.dot(pooled.astype(COMPUTE_DTYPE), wfc_ref[...],
                   preferred_element_type=jnp.float32) + bfc_ref[...]
  m = jnp.max(logits, axis=1, keepdims=True)
  e = jnp.exp(logits - m)
  denom = jnp.sum(e, axis=1, keepdims=True)
  # approx=True (EUP slot) is free headroom in production; exact keeps 1e-4.
  out_ref[...] = e * pl.reciprocal(denom, approx=False)


# ----------------------------- one-time parameter re-layout ------------------
def prepare_kernel_params(params):
  """Host-side, called once: fuse/pad weights so the jitted forward does no
  per-call re-layout work."""
  N, E, S, C = NUM_FILTERS, EMBEDDING_DIM, len(FILTER_SIZES), NUM_CLASSES

  # Embedding table padded to (V_PAD, E); rows >= VOCAB_SIZE are zero so the
  # PAD_ID token embeds to an all-zero vector.
  emb = np.zeros((V_PAD, E), np.float32)
  emb[:VOCAB_SIZE] = np.asarray(params['emb'], np.float32)

  # Fused conv weight: taps zero-padded to F_PAD=8, filter sizes stacked along
  # the lane-padded output axis -> (K_PAD, N_PAD) = (256, 128).
  w_conv = np.zeros((F_PAD, E, N_PAD), np.float32)
  b_conv = np.zeros((1, N_PAD), np.float32)
  mask = np.zeros((L_OUT_PAD, N_PAD), np.float32)           # post-ReLU 0/1 mask
  for s, f in enumerate(FILTER_SIZES):
    w = np.transpose(np.asarray(params['conv_w'][s], np.float32), (2, 1, 0))
    w_conv[:f, :, s * N:(s + 1) * N] = w                    # (f, E, N)
    b_conv[0, s * N:(s + 1) * N] = np.asarray(params['conv_b'][s], np.float32)
    # Windows l <= L - f are valid for this filter size; the rest (including
    # the padded rows 14-15) stay 0 and are zeroed post-ReLU (>=0, so the
    # max-pool over valid windows is unchanged).
    mask[:MAX_SENT_LEN - f + 1, s * N:(s + 1) * N] = 1.0
  w_conv = w_conv.reshape(K_PAD, N_PAD)

  # FC weight: PyTorch flatten order after cat(dim=2) is feature = n*S + s,
  # kernel column order is s*N + n -> permute once here.
  fc_w = np.asarray(params['fc_w'], np.float32)             # (C, N*S)
  w_fc_sn = np.transpose(fc_w.reshape(C, N, S), (2, 1, 0)).reshape(S * N, C)
  w_fc = np.zeros((N_PAD, C_PAD), np.float32)
  w_fc[:S * N, :C] = w_fc_sn
  b_fc = np.full((1, C_PAD), NEG_INF, np.float32)           # kill padded classes
  b_fc[0, :C] = np.asarray(params['fc_b'], np.float32)

  return {
      'emb': jnp.asarray(emb, COMPUTE_DTYPE),
      'w_conv': jnp.asarray(w_conv, COMPUTE_DTYPE),
      'b_conv': jnp.asarray(b_conv, jnp.float32),
      'mask': jnp.asarray(mask, jnp.float32),
      'w_fc': jnp.asarray(w_fc, COMPUTE_DTYPE),
      'b_fc': jnp.asarray(b_fc, jnp.float32),
  }


# ----------------------------- wrapper ---------------------------------------
@jax.jit
def textcnn_forward(tokens, kp):
  """tokens: (B, L) int32.  Returns (B, C) f32 softmax probs."""
  b = tokens.shape[0]
  tb = BATCH_TILE
  # >= 2 grid steps so the "parallel" batch axis splits across v7x's two
  # TensorCores and BlockSpec double-buffering overlaps DMA with compute.
  steps = max(2, pl.cdiv(b, tb))
  b_pad = steps * tb

  # Tokens are the only streamed per-example input.  Pad batch rows and the
  # sequence to L_X with PAD_ID (embeds to zero -> finite outputs, no NaNs in
  # discarded rows); shape (b_pad*L_X, 1) so the in-kernel one-hot compare is
  # a cheap size-1 lane broadcast.
  tok = jnp.pad(tokens.astype(jnp.int32),
                ((0, b_pad - b), (0, L_X - MAX_SENT_LEN)),
                constant_values=PAD_ID)
  tok = tok.reshape(b_pad * L_X, 1)

  out = pl.pallas_call(
      _textcnn_kernel,
      out_shape=jax.ShapeDtypeStruct((b_pad, C_PAD), jnp.float32),
      grid_spec=pltpu.PrefetchScalarGridSpec(
          num_scalar_prefetch=0,
          grid=(steps,),
          in_specs=[
              # Streamed per-tile input.
              pl.BlockSpec((tb * L_X, 1), lambda i: (i, 0)),
              # Grid-invariant operands (constant index_map).  When TB grows
              # to 256-512, add pipeline_mode=pl.Buffered(1) to these specs to
              # single-buffer ~200 KB of constants and reclaim VMEM for the
              # batch tile (most valuable on v7x's 64 MiB).
              pl.BlockSpec((V_PAD, EMBEDDING_DIM), lambda i: (0, 0)),
              pl.BlockSpec((K_PAD, N_PAD), lambda i: (0, 0)),
              pl.BlockSpec((1, N_PAD), lambda i: (0, 0)),
              pl.BlockSpec((L_OUT_PAD, N_PAD), lambda i: (0, 0)),
              pl.BlockSpec((N_PAD, C_PAD), lambda i: (0, 0)),
              pl.BlockSpec((1, C_PAD), lambda i: (0, 0)),
          ],
          out_specs=pl.BlockSpec((tb, C_PAD), lambda i: (i, 0)),
          scratch_shapes=[
              pltpu.VMEM((tb, L_OUT_PAD, K_PAD), COMPUTE_DTYPE),
          ],
      ),
      compiler_params=pltpu.CompilerParams(
          dimension_semantics=("parallel",)),
  )(tok, kp['emb'], kp['w_conv'], kp['b_conv'], kp['mask'],
    kp['w_fc'], kp['b_fc'])

  return out[:b, :NUM_CLASSES]


# ----------------------------- pure-JAX reference (PyTorch semantics) --------
def textcnn_reference(tokens, params):
  x = jnp.take(params['emb'], tokens, axis=0)               # (B, L, E)
  x = jnp.transpose(x, (0, 2, 1))                           # (B, E, L) == NCL
  pooled = []
  for w, b in zip(params['conv_w'], params['conv_b']):
    conv = jax.lax.conv_general_dilated(
        x, w, window_strides=(1,), padding='VALID',
        dimension_numbers=('NCH', 'OIH', 'NCH')) + b[None, :, None]
    conv = jax.nn.relu(conv)
    pooled.append(jnp.max(conv, axis=2, keepdims=True))     # (B, N, 1)
  out = jnp.concatenate(pooled, axis=2)                     # (B, N, S)
  out = out.reshape(out.shape[0], -1)                       # (B, N*S)
  logits = out @ params['fc_w'].T + params['fc_b']
  return jax.nn.softmax(logits, axis=1)


# ----------------------------- deterministic params --------------------------
def init_params(key):
  keys = jax.random.split(key, 4 + 2 * len(FILTER_SIZES))
  emb = jax.random.normal(keys[0], (VOCAB_SIZE, EMBEDDING_DIM),
                          jnp.float32) * 0.1
  conv_w, conv_b = [], []
  for i, f in enumerate(FILTER_SIZES):
    conv_w.append(jax.random.normal(keys[1 + 2 * i],
                                    (NUM_FILTERS, EMBEDDING_DIM, f),
                                    jnp.float32) * 0.1)
    conv_b.append(jax.random.normal(keys[2 + 2 * i],
                                    (NUM_FILTERS,), jnp.float32) * 0.1)
  fc_w = jax.random.normal(keys[-2],
                           (NUM_CLASSES, NUM_FILTERS * len(FILTER_SIZES)),
                           jnp.float32) * 0.1
  fc_b = jax.random.normal(keys[-1], (NUM_CLASSES,), jnp.float32) * 0.1
  return {'emb': emb, 'conv_w': conv_w, 'conv_b': conv_b,
          'fc_w': fc_w, 'fc_b': fc_b}


# ----------------------------- main -------------------------------------------
if __name__ == "__main__":
  key = jax.random.PRNGKey(0)
  pkey, tkey = jax.random.split(key)
  params = init_params(pkey)
  tokens = jax.random.randint(tkey, (B, MAX_SENT_LEN), 0, VOCAB_SIZE,
                              dtype=jnp.int32)

  kparams = prepare_kernel_params(params)   # one-time re-layout, outside jit

  out = jax.block_until_ready(textcnn_forward(tokens, kparams))
  ref = jax.block_until_ready(textcnn_reference(tokens, params))

  assert out.shape == (B, NUM_CLASSES)
  assert jnp.allclose(jnp.sum(out, axis=1), 1.0, atol=1e-4)
  assert jnp.allclose(out, ref, atol=1e-4, rtol=1e-4), (out, ref)

  print("KERNEL_OK")
</pallas_src>

<mosaic_0001>
module attributes {stable_mosaic.version = 11 : i64} {
  func.func @_textcnn_kernel(%arg0: i32, %arg1: memref<192x1xi32, #tpu.memory_space<vmem>>, %arg2: memref<128x32xf32, #tpu.memory_space<vmem>>, %arg3: memref<256x128xf32, #tpu.memory_space<vmem>>, %arg4: memref<1x128xf32, #tpu.memory_space<vmem>>, %arg5: memref<16x128xf32, #tpu.memory_space<vmem>>, %arg6: memref<128x128xf32, #tpu.memory_space<vmem>>, %arg7: memref<1x128xf32, #tpu.memory_space<vmem>>, %arg8: memref<8x128xf32, #tpu.memory_space<vmem>>, %arg9: memref<8x16x256xf32, #tpu.memory_space<vmem>>) attributes {dimension_semantics = [#tpu.dimension_semantics<parallel>], iteration_bounds = array<i64: 2>, scalar_prefetch = 0 : i64, scratch_operands = 1 : i64, tpu.core_type = #tpu.core_type<tc>, window_params = [{transform_indices = @transform_0, window_bounds = array<i64: 192, 1>}, {pipeline_mode = #tpu.pipeline_mode<synchronous>, transform_indices = @transform_1, window_bounds = array<i64: 128, 32>}, {pipeline_mode = #tpu.pipeline_mode<synchronous>, transform_indices = @transform_2, window_bounds = array<i64: 256, 128>}, {pipeline_mode = #tpu.pipeline_mode<synchronous>, transform_indices = @transform_3, window_bounds = array<i64: 1, 128>}, {pipeline_mode = #tpu.pipeline_mode<synchronous>, transform_indices = @transform_4, window_bounds = array<i64: 16, 128>}, {pipeline_mode = #tpu.pipeline_mode<synchronous>, transform_indices = @transform_5, window_bounds = array<i64: 128, 128>}, {pipeline_mode = #tpu.pipeline_mode<synchronous>, transform_indices = @transform_6, window_bounds = array<i64: 1, 128>}, {transform_indices = @transform_7, window_bounds = array<i64: 8, 128>}]} {
    %c0 = arith.constant 0 : index
    %c0_0 = arith.constant 0 : index
    %0 = vector.load %arg1[%c0, %c0_0] : memref<192x1xi32, #tpu.memory_space<vmem>>, vector<192x1xi32>
    %1 = tpu.iota {dimensions = array<i32: 1>} : vector<192x128xi32>
    %2 = vector.broadcast %0 : vector<192x1xi32> to vector<192x128xi32>
    %3 = arith.cmpi eq, %2, %1 : vector<192x128xi32>
    %cst = arith.constant 1.000000e+00 : f32
    %cst_1 = arith.constant 0.000000e+00 : f32
    %4 = vector.broadcast %cst : f32 to vector<192x128xf32>
    %5 = vector.broadcast %cst_1 : f32 to vector<192x128xf32>
    %6 = arith.select %3, %4, %5 : vector<192x128xi1>, vector<192x128xf32>
    %c0_2 = arith.constant 0 : index
    %c0_3 = arith.constant 0 : index
    %7 = vector.load %arg2[%c0_2, %c0_3] : memref<128x32xf32, #tpu.memory_space<vmem>>, vector<128x32xf32>
    %cst_4 = arith.constant dense<0.000000e+00> : vector<192x32xf32>
    %8 = tpu.matmul %6, %7, %cst_4 {dimension_numbers = #tpu.dot_dimension_numbers<[1], [0], [0], [1], [0, 0, 1, 1], [], []>} : vector<192x128xf32>, vector<128x32xf32>, vector<192x32xf32> -> vector<192x32xf32>
    %9 = vector.shape_cast %8 : vector<192x32xf32> to vector<8x24x32xf32>
    %10 = vector.extract_strided_slice %9 {offsets = [0, 0, 0], sizes = [8, 16, 32], strides = [1, 1, 1]} : vector<8x24x32xf32> to vector<8x16x32xf32>
    %c0_5 = arith.constant 0 : index
    %c0_6 = arith.constant 0 : index
    %c0_7 = arith.constant 0 : index
    %11 = vector.load %arg9[%c0_5, %c0_6, %c0_7] : memref<8x16x256xf32, #tpu.memory_space<vmem>>, vector<8x16x32xf32>
    tpu.vector_store %arg9[%c0_5, %c0_6, %c0_7], %10 {strides = array<i32>} : memref<8x16x256xf32, #tpu.memory_space<vmem>>, vector<8x16x32xf32>,
    %12 = vector.extract_strided_slice %9 {offsets = [0, 1, 0], sizes = [8, 16, 32], strides = [1, 1, 1]} : vector<8x24x32xf32> to vector<8x16x32xf32>
    %c0_8 = arith.constant 0 : index
    %c0_9 = arith.constant 0 : index
    %c32 = arith.constant 32 : index
    %13 = vector.load %arg9[%c0_8, %c0_9, %c32] : memref<8x16x256xf32, #tpu.memory_space<vmem>>, vector<8x16x32xf32>
    tpu.vector_store %arg9[%c0_8, %c0_9, %c32], %12 {strides = array<i32>} : memref<8x16x256xf32, #tpu.memory_space<vmem>>, vector<8x16x32xf32>,
    %14 = vector.extract_strided_slice %9 {offsets = [0, 2, 0], sizes = [8, 16, 32], strides = [1, 1, 1]} : vector<8x24x32xf32> to vector<8x16x32xf32>
    %c0_10 = arith.constant 0 : index
    %c0_11 = arith.constant 0 : index
    %c64 = arith.constant 64 : index
    %15 = vector.load %arg9[%c0_10, %c0_11, %c64] : memref<8x16x256xf32, #tpu.memory_space<vmem>>, vector<8x16x32xf32>
    tpu.vector_store %arg9[%c0_10, %c0_11, %c64], %14 {strides = array<i32>} : memref<8x16x256xf32, #tpu.memory_space<vmem>>, vector<8x16x32xf32>,
    %16 = vector.extract_strided_slice %9 {offsets = [0, 3, 0], sizes = [8, 16, 32], strides = [1, 1, 1]} : vector<8x24x32xf32> to vector<8x16x32xf32>
    %c0_12 = arith.constant 0 : index
    %c0_13 = arith.constant 0 : index
    %c96 = arith.constant 96 : index
    %17 = vector.load %arg9[%c0_12, %c0_13, %c96] : memref<8x16x256xf32, #tpu.memory_space<vmem>>, vector<8x16x32xf32>
    tpu.vector_store %arg9[%c0_12, %c0_13, %c96], %16 {strides = array<i32>} : memref<8x16x256xf32, #tpu.memory_space<vmem>>, vector<8x16x32xf32>,
    %18 = vector.extract_strided_slice %9 {offsets = [0, 4, 0], sizes = [8, 16, 32], strides = [1, 1, 1]} : vector<8x24x32xf32> to vector<8x16x32xf32>
    %c0_14 = arith.constant 0 : index
    %c0_15 = arith.constant 0 : index
    %c128 = arith.constant 128 : index
    %19 = vector.load %arg9[%c0_14, %c0_15, %c128] : memref<8x16x256xf32, #tpu.memory_space<vmem>>, vector<8x16x32xf32>
    tpu.vector_store %arg9[%c0_14, %c0_15, %c128], %18 {strides = array<i32>} : memref<8x16x256xf32, #tpu.memory_space<vmem>>, vector<8x16x32xf32>,
    %20 = vector.extract_strided_slice %9 {offsets = [0, 5, 0], sizes = [8, 16, 32], strides = [1, 1, 1]} : vector<8x24x32xf32> to vector<8x16x32xf32>
    %c0_16 = arith.constant 0 : index
    %c0_17 = arith.constant 0 : index
    %c160 = arith.constant 160 : index
    %21 = vector.load %arg9[%c0_16, %c0_17, %c160] : memref<8x16x256xf32, #tpu.memory_space<vmem>>, vector<8x16x32xf32>
    tpu.vector_store %arg9[%c0_16, %c0_17, %c160], %20 {strides = array<i32>} : memref<8x16x256xf32, #tpu.memory_space<vmem>>, vector<8x16x32xf32>,
    %22 = vector.extract_strided_slice %9 {offsets = [0, 6, 0], sizes = [8, 16, 32], strides = [1, 1, 1]} : vector<8x24x32xf32> to vector<8x16x32xf32>
    %c0_18 = arith.constant 0 : index
    %c0_19 = arith.constant 0 : index
    %c192 = arith.constant 192 : index
    %23 = vector.load %arg9[%c0_18, %c0_19, %c192] : memref<8x16x256xf32, #tpu.memory_space<vmem>>, vector<8x16x32xf32>
    tpu.vector_store %arg9[%c0_18, %c0_19, %c192], %22 {strides = array<i32>} : memref<8x16x256xf32, #tpu.memory_space<vmem>>, vector<8x16x32xf32>,
    %24 = vector.extract_strided_slice %9 {offsets = [0, 7, 0], sizes = [8, 16, 32], strides = [1, 1, 1]} : vector<8x24x32xf32> to vector<8x16x32xf32>
    %c0_20 = arith.constant 0 : index
    %c0_21 = arith.constant 0 : index
    %c224 = arith.constant 224 : index
    %25 = vector.load %arg9[%c0_20, %c0_21, %c224] : memref<8x16x256xf32, #tpu.memory_space<vmem>>, vector<8x16x32xf32>
    tpu.vector_store %arg9[%c0_20, %c0_21, %c224], %24 {strides = array<i32>} : memref<8x16x256xf32, #tpu.memory_space<vmem>>, vector<8x16x32xf32>,
    %c0_22 = arith.constant 0 : index
    %c0_23 = arith.constant 0 : index
    %c0_24 = arith.constant 0 : index
    %26 = vector.load %arg9[%c0_22, %c0_23, %c0_24] : memref<8x16x256xf32, #tpu.memory_space<vmem>>, vector<8x16x256xf32>
    %27 = vector.shape_cast %26 : vector<8x16x256xf32> to vector<128x256xf32>
    %c0_25 = arith.constant 0 : index
    %c0_26 = arith.constant 0 : index
    %28 = vector.load %arg3[%c0_25, %c0_26] : memref<256x128xf32, #tpu.memory_space<vmem>>, vector<256x128xf32>
    %cst_27 = arith.constant dense<0.000000e+00> : vector<128x128xf32>
    %29 = tpu.matmul %27, %28, %cst_27 {dimension_numbers = #tpu.dot_dimension_numbers<[1], [0], [0], [1], [0, 0, 1, 1], [], []>} : vector<128x256xf32>, vector<256x128xf32>, vector<128x128xf32> -> vector<128x128xf32>
    %c0_28 = arith.constant 0 : index
    %c0_29 = arith.constant 0 : index
    %30 = vector.load %arg4[%c0_28, %c0_29] : memref<1x128xf32, #tpu.memory_space<vmem>>, vector<1x128xf32>
    %31 = vector.broadcast %30 : vector<1x128xf32> to vector<128x128xf32>
    %32 = arith.addf %29, %31 : vector<128x128xf32>
    %cst_30 = arith.constant 0.000000e+00 : f32
    %33 = vector.broadcast %cst_30 : f32 to vector<128x128xf32>
    %34 = arith.maximumf %32, %33 : vector<128x128xf32>
    %35 = vector.shape_cast %34 : vector<128x128xf32> to vector<8x16x128xf32>
    %c0_31 = arith.constant 0 : index
    %c0_32 = arith.constant 0 : index
    %36 = vector.load %arg5[%c0_31, %c0_32] : memref<16x128xf32, #tpu.memory_space<vmem>>, vector<16x128xf32>
    %37 = vector.shape_cast %36 : vector<16x128xf32> to vector<1x16x128xf32>
    %38 = vector.broadcast %37 : vector<1x16x128xf32> to vector<8x16x128xf32>
    %39 = arith.mulf %35, %38 : vector<8x16x128xf32>
    %cst_33 = arith.constant dense<0xFF800000> : vector<8x128xf32>
    %40 = vector.multi_reduction <maximumf>, %39, %cst_33 [1] : vector<8x16x128xf32> to vector<8x128xf32>
    %c0_34 = arith.constant 0 : index
    %c0_35 = arith.constant 0 : index
    %41 = vector.load %arg6[%c0_34, %c0_35] : memref<128x128xf32, #tpu.memory_space<vmem>>, vector<128x128xf32>
    %cst_36 = arith.constant dense<0.000000e+00> : vector<8x128xf32>
    %42 = tpu.matmul %40, %41, %cst_36 {dimension_numbers = #tpu.dot_dimension_numbers<[1], [0], [0], [1], [0, 0, 1, 1], [], []>} : vector<8x128xf32>, vector<128x128xf32>, vector<8x128xf32> -> vector<8x128xf32>
    %c0_37 = arith.constant 0 : index
    %c0_38 = arith.constant 0 : index
    %43 = vector.load %arg7[%c0_37, %c0_38] : memref<1x128xf32, #tpu.memory_space<vmem>>, vector<1x128xf32>
    %44 = vector.broadcast %43 : vector<1x128xf32> to vector<8x128xf32>
    %45 = arith.addf %42, %44 : vector<8x128xf32>
    %cst_39 = arith.constant dense<0xFF800000> : vector<8xf32>
    %46 = vector.multi_reduction <maximumf>, %45, %cst_39 [1] : vector<8x128xf32> to vector<8xf32>
    %47 = vector.shape_cast %46 : vector<8xf32> to vector<8x1xf32>
    %48 = vector.broadcast %47 : vector<8x1xf32> to vector<8x128xf32>
    %49 = arith.subf %45, %48 : vector<8x128xf32>
    %50 = math.exp %49 : vector<8x128xf32>
    %cst_40 = arith.constant dense<0.000000e+00> : vector<8xf32>
    %51 = vector.multi_reduction <add>, %50, %cst_40 [1] : vector<8x128xf32> to vector<8xf32>
    %52 = vector.shape_cast %51 : vector<8xf32> to vector<8x1xf32>
    %53 = tpu.reciprocal %52 : vector<8x1xf32> -> vector<8x1xf32>
    %54 = vector.broadcast %53 : vector<8x1xf32> to vector<8x128xf32>
    %55 = arith.mulf %50, %54 : vector<8x128xf32>
    %c0_41 = arith.constant 0 : index
    %c0_42 = arith.constant 0 : index
    %56 = vector.load %arg8[%c0_41, %c0_42] : memref<8x128xf32, #tpu.memory_space<vmem>>, vector<8x128xf32>
    tpu.vector_store %arg8[%c0_41, %c0_42], %55 {strides = array<i32>} : memref<8x128xf32, #tpu.memory_space<vmem>>, vector<8x128xf32>,
    return
  }
  func.func @transform_0(%arg0: i32) -> (i32, i32) {
    %c0_i32 = arith.constant 0 : i32
    %c0_i32_0 = arith.constant 0 : i32
    return %arg0, %c0_i32 : i32, i32
  }
  func.func @transform_1(%arg0: i32) -> (i32, i32) {
    %c0_i32 = arith.constant 0 : i32
    %c0_i32_0 = arith.constant 0 : i32
    %c0_i32_1 = arith.constant 0 : i32
    return %c0_i32, %c0_i32_0 : i32, i32
  }
  func.func @transform_2(%arg0: i32) -> (i32, i32) {
    %c0_i32 = arith.constant 0 : i32
    %c0_i32_0 = arith.constant 0 : i32
    %c0_i32_1 = arith.constant 0 : i32
    return %c0_i32, %c0_i32_0 : i32, i32
  }
  func.func @transform_3(%arg0: i32) -> (i32, i32) {
    %c0_i32 = arith.constant 0 : i32
    %c0_i32_0 = arith.constant 0 : i32
    %c0_i32_1 = arith.constant 0 : i32
    return %c0_i32, %c0_i32_0 : i32, i32
  }
  func.func @transform_4(%arg0: i32) -> (i32, i32) {
    %c0_i32 = arith.constant 0 : i32
    %c0_i32_0 = arith.constant 0 : i32
    %c0_i32_1 = arith.constant 0 : i32
    return %c0_i32, %c0_i32_0 : i32, i32
  }
  func.func @transform_5(%arg0: i32) -> (i32, i32) {
    %c0_i32 = arith.constant 0 : i32
    %c0_i32_0 = arith.constant 0 : i32
    %c0_i32_1 = arith.constant 0 : i32
    return %c0_i32, %c0_i32_0 : i32, i32
  }
  func.func @transform_6(%arg0: i32) -> (i32, i32) {
    %c0_i32 = arith.constant 0 : i32
    %c0_i32_0 = arith.constant 0 : i32
    %c0_i32_1 = arith.constant 0 : i32
    return %c0_i32, %c0_i32_0 : i32, i32
  }
  func.func @transform_7(%arg0: i32) -> (i32, i32) {
    %c0_i32 = arith.constant 0 : i32
    %c0_i32_0 = arith.constant 0 : i32
    return %arg0, %c0_i32 : i32, i32
  }
}

</mosaic_0001>

<bundles_post_ra>
// kernel: textcnn_forward.1
= control target key start
LH: loop header
LB: loop body
LE: loop exit
PB: predicated region body
PF: predicated region fallthrough
CT: control target
= control target key end

     0   :  { %s2209_s24 = smov 0   ;;  %s3382_s0 = inlined_call_operand.vmem [shape: s32[384,1], index: 0, kind: input, shape index: {}]   ;;  %s3383_s1 = inlined_call_operand.vmem [shape: f32[128,32], index: 1, kind: input, shape index: {}]   ;;  %s3384_s2 = inlined_call_operand.vmem [shape: f32[256,128], index: 2, kind: input, shape index: {}]   ;;  %s3385_s3 = inlined_call_operand.vmem [shape: f32[1,128], index: 3, kind: input, shape index: {}]   ;;  %s3386_s4 = inlined_call_operand.vmem [shape: f32[16,128], index: 4, kind: input, shape index: {}]   ;;  %s3387_s5 = inlined_call_operand.vmem [shape: f32[128,128], index: 5, kind: input, shape index: {}]   ;;  %s3388_s6 = inlined_call_operand.vmem [shape: f32[1,128], index: 6, kind: input, shape index: {}]   ;;  %s3389_s7 = inlined_call_operand.vmem [shape: f32[16,128], index: 7, kind: output, shape index: {}]  }
   0x1 LB: > { %s2215_s25 = sadd.s32 4294967295, %s2160_s24   ;;  %p1862_p0 = scmp.ge.s32.totalorder %s2160_s24, 1  ;;  %s2160_s24 = sphi %s2209_s24, %s17_s24  }
   0x2   : > { %p238_p1 = scmp.lt.s32.totalorder %s2160_s24, 3 }
   0x4   : > { %p239_p2 = pnand %p1862_p0, %p238_p1 }
   0x6   : > { %242 = sbr.rel (%p239_p2) target bundleno = 1383 (0x567), region = 48 }
   0xb   : > { %s269_s26 = smul.u32 24, %s2215_s25  ;;  %v440_v0 = vld [vmem:[%s3383_s1 + $0x78] sm:$0xff]  ;;  %v2162_v1 = vmov 0   ;;  %v439_v2 = vld [vmem:[%s3383_s1 + $0x70] sm:$0xff]  ;;  %v438_v3 = vld [vmem:[%s3383_s1 + $0x68] sm:$0xff]  ;;  %v303_v41 = vlaneseq  ;;  %v2163_v45 = vmov 1.0  }
   0xc   : > { %2149 = vset.pattern.permute.xlu1 %v2162_v1  ;;  %2148 = vset.pattern.permute.xlu0 %v2162_v1  ;;  %v437_v4 = vld [vmem:[%s3383_s1 + $0x60] sm:$0xff]  ;;  %v436_v7 = vld [vmem:[%s3383_s1 + $0x58] sm:$0xff]  ;;  %v435_v10 = vld [vmem:[%s3383_s1 + $0x50] sm:$0xff]  ;;  %s2164_s14 = smov 32   ;;  %s2165_s21 = smov 64  }
   0xd   : > { %p270_p3 = scmp.lt.s32.totalorder %s269_s26, 47  ;;  %2030 = vmatprep.subr.mxu0 %v440_v0  ;;  %v434_v11 = vld [vmem:[%s3383_s1 + $0x48] sm:$0xff]  ;;  %v433_v14 = vld [vmem:[%s3383_s1 + $0x40] sm:$0xff]  ;;  %v432_v17 = vld [vmem:[%s3383_s1 + $0x38] sm:$0xff]  ;;  %v2297_v42 = vand.u32 127, %v303_v41  ;;  %s2166_s22 = smov 96  }
   0xe   : > { %2031 = vmatpush3.msra.mxu0 %v440_v0  ;;  %v431_v18 = vld [vmem:[%s3383_s1 + $0x30] sm:$0xff]  ;;  %v430_v21 = vld [vmem:[%s3383_s1 + $0x28] sm:$0xff]  ;;  %v429_v24 = vld [vmem:[%s3383_s1 + $0x20] sm:$0xff]  ;;  %p275_p4 = scmp.lt.s32.totalorder %s2215_s25, 1 }
   0xf   : > { %s3460_s26 = smov (!%p270_p3, %s269_s26), 47  ;;  %2032 = vmatprep.subr.mxu0 %v439_v2  ;;  %v428_v25 = vld [vmem:[%s3383_s1 + $0x18] sm:$0xff]  ;;  %v427_v28 = vld [vmem:[%s3383_s1 + $0x10] sm:$0xff]  ;;  %v426_v31 = vld [vmem:[%s3383_s1 + $0x8] sm:$0xff] }
  0x10   : > { %2033 = vmatpush3.msra.mxu0 %v439_v2  ;;  %s1863_s12 = sshll.u32 %s3460_s26, 3  ;;  %v425_v32 = vld [vmem:[%s3383_s1] sm:$0xff]  ;;  %s3462_s25 = smov (!%p275_p4, %s2215_s25), 1 }
  0x11   : > { %2034 = vmatprep.subr.mxu0 %v438_v3  ;;  %s2235_s15 = scalar_lea.vmem %s3382_s0, %s1863_s12 }
  0x12   : > { %2035 = vmatpush3.msra.mxu0 %v438_v3  ;;  %v281_v5 = vld [vmem:[%s2235_s15 + $0x10] sm:$0xff]  ;;  %v279_v6 = vld [vmem:[%s2235_s15] sm:$0xff]  ;;  %v282_v8 = vld [vmem:[%s2235_s15 + $0x18] sm:$0xff] }
  0x13   : > { %2036 = vmatprep.subr.mxu0 %v437_v4  ;;  %312 = vperm.xlu1 %2149, %v281_v5   ;;  %v280_v9 = vld [vmem:[%s2235_s15 + $0x8] sm:$0xff]  ;;  %v283_v13 = vld [vmem:[%s2235_s15 + $0x20] sm:$0xff]  ;;  %v286_v15 = vld [vmem:[%s2235_s15 + $0x38] sm:$0xff] }
  0x14   : > { %306 = vperm.xlu0 %2148, %v279_v6   ;;  %2037 = vmatpush3.msra.mxu0 %v437_v4  ;;  %v284_v12 = vld [vmem:[%s2235_s15 + $0x28] sm:$0xff]  ;;  %v285_v16 = vld [vmem:[%s2235_s15 + $0x30] sm:$0xff]  ;;  %v287_v20 = vld [vmem:[%s2235_s15 + $0x40] sm:$0xff] }
  0x15   : > { %2038 = vmatprep.subr.mxu0 %v436_v7  ;;  %v288_v19 = vld [vmem:[%s2235_s15 + $0x48] sm:$0xff]  ;;  %v290_v22 = vld [vmem:[%s2235_s15 + $0x58] sm:$0xff]  ;;  %v289_v23 = vld [vmem:[%s2235_s15 + $0x50] sm:$0xff] }
  0x16   : > { %2039 = vmatpush3.msra.mxu0 %v436_v7  ;;  %v292_v26 = vld [vmem:[%s2235_s15 + $0x68] sm:$0xff]  ;;  %v291_v27 = vld [vmem:[%s2235_s15 + $0x60] sm:$0xff]  ;;  %v294_v29 = vld [vmem:[%s2235_s15 + $0x78] sm:$0xff] }
  0x17   : > { %315 = vperm.xlu1 %2149, %v282_v8   ;;  %2040 = vmatprep.subr.mxu0 %v435_v10  ;;  %v293_v30 = vld [vmem:[%s2235_s15 + $0x70] sm:$0xff]  ;;  %v296_v33 = vld [vmem:[%s2235_s15 + $0x88] sm:$0xff]  ;;  %v295_v34 = vld [vmem:[%s2235_s15 + $0x80] sm:$0xff] }
  0x18   : > { %309 = vperm.xlu0 %2148, %v280_v9   ;;  %2041 = vmatpush3.msra.mxu0 %v435_v10  ;;  %v298_v35 = vld [vmem:[%s2235_s15 + $0x98] sm:$0xff]  ;;  %v297_v36 = vld [vmem:[%s2235_s15 + $0x90] sm:$0xff]  ;;  %v300_v37 = vld [vmem:[%s2235_s15 + $0xa8] sm:$0xff] }
  0x19   : > { %2042 = vmatprep.subr.mxu0 %v434_v11  ;;  %v299_v38 = vld [vmem:[%s2235_s15 + $0xa0] sm:$0xff]  ;;  %v302_v39 = vld [vmem:[%s2235_s15 + $0xb8] sm:$0xff]  ;;  %v301_v40 = vld [vmem:[%s2235_s15 + $0xb0] sm:$0xff] }
  0x1a   : > { %2043 = vmatpush3.msra.mxu0 %v434_v11  ;;  %v1436_v4 = vld [vmem:[%s3384_s2 + $0xf8] sm:$0xff]  ;;  %v1435_v6 = vld [vmem:[%s3384_s2 + $0xf0] sm:$0xff]  ;;  %v1434_v8 = vld [vmem:[%s3384_s2 + $0xe8] sm:$0xff] }
  0x1b   : > { %321 = vperm.xlu1 %2149, %v284_v12   ;;  %2044 = vmatprep.subr.mxu0 %v433_v14  ;;  %v1420_v5 = vld [vmem:[%s3384_s2 + $0x78] sm:$0xff]  ;;  %v1419_v7 = vld [vmem:[%s3384_s2 + $0x70] sm:$0xff]  ;;  %v1418_v9 = vld [vmem:[%s3384_s2 + $0x68] sm:$0xff] }
  0x1c   : > { %318 = vperm.xlu0 %2148, %v283_v13   ;;  %2045 = vmatpush3.msra.mxu0 %v433_v14  ;;  %v1433_v10 = vld [vmem:[%s3384_s2 + $0xe0] sm:$0xff]  ;;  %v1432_v12 = vld [vmem:[%s3384_s2 + $0xd8] sm:$0xff]  ;;  %v1431_v14 = vld [vmem:[%s3384_s2 + $0xd0] sm:$0xff] }
  0x1d   : > { %2046 = vmatprep.subr.mxu0 %v432_v17  ;;  %1933 = vmatprep.subr.mxu1 %v1436_v4  ;;  %v1417_v11 = vld [vmem:[%s3384_s2 + $0x60] sm:$0xff]  ;;  %v1416_v13 = vld [vmem:[%s3384_s2 + $0x58] sm:$0xff] }
  0x1e   : > { %2047 = vmatpush3.msra.mxu0 %v432_v17  ;;  %1934 = vmatpush3.msra.mxu1 %v1420_v5  ;;  %v1414_v17 = vld [vmem:[%s3384_s2 + $0x48] sm:$0xff] }
  0x1f   : > { %327 = vperm.xlu1 %2149, %v286_v15   ;;  %2048 = vmatprep.subr.mxu0 %v431_v18  ;;  %v1415_v15 = vld [vmem:[%s3384_s2 + $0x50] sm:$0xff] }
  0x20   : > { %324 = vperm.xlu0 %2148, %v285_v16   ;;  %2049 = vmatpush3.msra.mxu0 %v431_v18  ;;  %v1430_v16 = vld [vmem:[%s3384_s2 + $0xc8] sm:$0xff]  ;;  %v1429_v18 = vld [vmem:[%s3384_s2 + $0xc0] sm:$0xff] }
  0x21   : > { %2050 = vmatprep.subr.mxu0 %v430_v21  ;;  %1935 = vmatprep.subr.mxu1 %v1435_v6 }
  0x22   : > { %2051 = vmatpush3.msra.mxu0 %v430_v21  ;;  %1936 = vmatpush3.msra.mxu1 %v1419_v7  ;;  %v1412_v21 = vld [vmem:[%s3384_s2 + $0x38] sm:$0xff] }
  0x23   : > { %333 = vperm.xlu1 %2149, %v288_v19   ;;  %2052 = vmatprep.subr.mxu0 %v429_v24  ;;  %v1413_v19 = vld [vmem:[%s3384_s2 + $0x40] sm:$0xff] }
  0x24   : > { %330 = vperm.xlu0 %2148, %v287_v20   ;;  %2053 = vmatpush3.msra.mxu0 %v429_v24  ;;  %v1428_v20 = vld [vmem:[%s3384_s2 + $0xb8] sm:$0xff]  ;;  %v1426_v24 = vld [vmem:[%s3384_s2 + $0xa8] sm:$0xff] }
  0x25   : > { %2054 = vmatprep.subr.mxu0 %v428_v25  ;;  %1937 = vmatprep.subr.mxu1 %v1434_v8 }
  0x26   : > { %2055 = vmatpush3.msra.mxu0 %v428_v25  ;;  %1938 = vmatpush3.msra.mxu1 %v1418_v9  ;;  %v1410_v25 = vld [vmem:[%s3384_s2 + $0x28] sm:$0xff] }
  0x27   : > { %339 = vperm.xlu1 %2149, %v290_v22   ;;  %2056 = vmatprep.subr.mxu0 %v427_v28  ;;  %v1427_v22 = vld [vmem:[%s3384_s2 + $0xb0] sm:$0xff] }
  0x28   : > { %336 = vperm.xlu0 %2148, %v289_v23   ;;  %2057 = vmatpush3.msra.mxu0 %v427_v28  ;;  %v1411_v23 = vld [vmem:[%s3384_s2 + $0x30] sm:$0xff]  ;;  %v1409_v28 = vld [vmem:[%s3384_s2 + $0x20] sm:$0xff] }
  0x29   : > { %2058 = vmatprep.subr.mxu0 %v426_v31  ;;  %1939 = vmatprep.subr.mxu1 %v1433_v10 }
  0x2a   : > { %2059 = vmatpush3.msra.mxu0 %v426_v31  ;;  %1940 = vmatpush3.msra.mxu1 %v1417_v11  ;;  %v1408_v31 = vld [vmem:[%s3384_s2 + $0x18] sm:$0xff] }
  0x2b   : > { %345 = vperm.xlu1 %2149, %v292_v26   ;;  %2060 = vmatprep.subr.mxu0 %v425_v32  ;;  %v1425_v26 = vld [vmem:[%s3384_s2 + $0xa0] sm:$0xff] }
  0x2c   : > { %342 = vperm.xlu0 %2148, %v291_v27   ;;  %2061 = vmatpush3.msra.mxu0 %v425_v32  ;;  %v1423_v32 = vld [vmem:[%s3384_s2 + $0x90] sm:$0xff] }
  0x2d   : > { %1941 = vmatprep.subr.mxu1 %v1432_v12 }
  0x2e   : > { %1942 = vmatpush3.msra.mxu1 %v1416_v13 }
  0x2f   : > { %351 = vperm.xlu1 %2149, %v294_v29   ;;  %1943 = vmatprep.subr.mxu1 %v1431_v14  ;;  %v1424_v29 = vld [vmem:[%s3384_s2 + $0x98] sm:$0xff] }
  0x30   : > { %348 = vperm.xlu0 %2148, %v293_v30   ;;  %1944 = vmatpush3.msra.mxu1 %v1415_v15 }
  0x31   : > { %1945 = vmatprep.subr.mxu1 %v1430_v16 }
  0x32   : > { %1946 = vmatpush3.msra.mxu1 %v1414_v17 }
  0x33   : > { %357 = vperm.xlu1 %2149, %v296_v33   ;;  %1947 = vmatprep.subr.mxu1 %v1429_v18 }
  0x34   : > { %354 = vperm.xlu0 %2148, %v295_v34   ;;  %1948 = vmatpush3.msra.mxu1 %v1413_v19 }
  0x35   : > { %1949 = vmatprep.subr.mxu1 %v1428_v20 }
  0x36   : > { %1950 = vmatpush3.msra.mxu1 %v1412_v21 }
  0x37   : > { %363 = vperm.xlu1 %2149, %v298_v35   ;;  %1951 = vmatprep.subr.mxu1 %v1427_v22 }
  0x38   : > { %360 = vperm.xlu0 %2148, %v297_v36   ;;  %1952 = vmatpush3.msra.mxu1 %v1411_v23 }
  0x39   : > { %1953 = vmatprep.subr.mxu1 %v1426_v24 }
  0x3a   : > { %1954 = vmatpush3.msra.mxu1 %v1410_v25 }
  0x3b   : > { %369 = vperm.xlu1 %2149, %v300_v37   ;;  %1955 = vmatprep.subr.mxu1 %v1425_v26 }
  0x3c   : > { %366 = vperm.xlu0 %2148, %v299_v38   ;;  %1956 = vmatpush3.msra.mxu1 %v1409_v28 }
  0x3d   : > { %1957 = vmatprep.subr.mxu1 %v1424_v29 }
  0x3e   : > { %1958 = vmatpush3.msra.mxu1 %v1408_v31 }
  0x3f   : > { %375 = vperm.xlu1 %2149, %v302_v39   ;;  %1959 = vmatprep.subr.mxu1 %v1423_v32 }
  0x40   : > { %372 = vperm.xlu0 %2148, %v301_v40  }
  0x8e   : > { %v313_v43 = vpop.permute.xlu1 %312 }
  0x8f   : > { %v307_v44 = vpop.permute.xlu0 %306  ;;  %vm379_vm1 = vcmp.eq.s32.totalorder %v313_v43, %v2297_v42 }
  0x90   : > { %vm377_vm0 = vcmp.eq.s32.totalorder %v307_v44, %v2297_v42  ;;  %v1407_v44 = vld [vmem:[%s3384_s2 + $0x10] sm:$0xff] }
  0x91   : > { %2062 = vmatprep.mubr.msk.f32.mxu0 %vm377_vm0, %v2163_v45  ;;  %1960 = vmatpush3.msra.mxu1 %v1407_v44 }
  0x92   : > { %v316_v46 = vpop.permute.xlu1 %315 }
  0x93   : > { %v310_v47 = vpop.permute.xlu0 %309  ;;  %vm380_vm3 = vcmp.eq.s32.totalorder %v316_v46, %v2297_v42 }
  0x94   : > { %vm378_vm2 = vcmp.eq.s32.totalorder %v310_v47, %v2297_v42 }
  0x95   : > { %2063 = vmatmul.mubr.msk.f32.vlgmr.msra.gmra.mxu0 %vm378_vm2, %v2163_v45 }
  0x96   : > { %2065 = vmatprep.mubr.msk.f32.mxu0 %vm379_vm1, %v2163_v45  ;;  %v322_v48 = vpop.permute.xlu1 %321 }
  0x97   : > { %v319_v49 = vpop.permute.xlu0 %318  ;;  %vm382_vm5 = vcmp.eq.s32.totalorder %v322_v48, %v2297_v42 }
  0x98   : > { %vm381_vm4 = vcmp.eq.s32.totalorder %v319_v49, %v2297_v42  ;;  %v1406_v49 = vld [vmem:[%s3384_s2 + $0x8] sm:$0xff] }
  0x99   : > { %2066 = vmatmul.mubr.msk.f32.gmra.mxu0 %vm380_vm3, %v2163_v45 }
  0x9a   : > { %2068 = vmatprep.mubr.msk.f32.mxu0 %vm381_vm4, %v2163_v45  ;;  %v328_v50 = vpop.permute.xlu1 %327 }
  0x9b   : > { %v325_v51 = vpop.permute.xlu0 %324  ;;  %vm384_vm7 = vcmp.eq.s32.totalorder %v328_v50, %v2297_v42 }
  0x9c   : > { %vm383_vm6 = vcmp.eq.s32.totalorder %v325_v51, %v2297_v42 }
  0x9d   : > { %2069 = vmatmul.mubr.msk.f32.gmra.mxu0 %vm382_vm5, %v2163_v45 }
  0x9e   : > { %2071 = vmatprep.mubr.msk.f32.mxu0 %vm383_vm6, %v2163_v45  ;;  %v334_v52 = vpop.permute.xlu1 %333 }
  0x9f   : > { %v331_v53 = vpop.permute.xlu0 %330  ;;  %vm386_vm9 = vcmp.eq.s32.totalorder %v334_v52, %v2297_v42 }
  0xa0   : > { %vm385_vm8 = vcmp.eq.s32.totalorder %v331_v53, %v2297_v42 }
  0xa1   : > { %2072 = vmatmul.mubr.msk.f32.gmra.mxu0 %vm384_vm7, %v2163_v45 }
  0xa2   : > { %2074 = vmatprep.mubr.msk.f32.mxu0 %vm385_vm8, %v2163_v45  ;;  %v340_v54 = vpop.permute.xlu1 %339  ;;  %vm626_vm8 = vcmask 261120  }
  0xa3   : > { %v337_v55 = vpop.permute.xlu0 %336  ;;  %vm388_vm11 = vcmp.eq.s32.totalorder %v340_v54, %v2297_v42 }
  0xa4   : > { %vm387_vm10 = vcmp.eq.s32.totalorder %v337_v55, %v2297_v42 }
  0xa5   : > { %2075 = vmatmul.mubr.msk.f32.gmra.mxu0 %vm386_vm9, %v2163_v45  ;;  %vm1058_vm9 = vcmask 1042432  }
  0xa6   : > { %2077 = vmatprep.mubr.msk.f32.mxu0 %vm387_vm10, %v2163_v45  ;;  %v346_v56 = vpop.permute.xlu1 %345  ;;  %vm667_vm10 = vcmask 1046528  }
  0xa7   : > { %v343_v57 = vpop.permute.xlu0 %342  ;;  %vm390_vm13 = vcmp.eq.s32.totalorder %v346_v56, %v2297_v42 }
  0xa8   : > { %vm389_vm12 = vcmp.eq.s32.totalorder %v343_v57, %v2297_v42 }
  0xa9   : > { %2078 = vmatmul.mubr.msk.f32.gmra.mxu0 %vm388_vm11, %v2163_v45  ;;  %vm1163_vm11 = vcmask 1041408  }
  0xaa   : > { %2080 = vmatprep.mubr.msk.f32.mxu0 %vm389_vm12, %v2163_v45  ;;  %v352_v58 = vpop.permute.xlu1 %351  ;;  %vm773_vm12 = vcmask 1045504  }
  0xab   : > { %v349_v59 = vpop.permute.xlu0 %348  ;;  %vm392_vm15 = vcmp.eq.s32.totalorder %v352_v58, %v2297_v42  ;;  %v1421_v58 = vld [vmem:[%s3384_s2 + $0x80] sm:$0xff] }
  0xac   : > { %vm391_vm14 = vcmp.eq.s32.totalorder %v349_v59, %v2297_v42 }
  0xad   : > { %2081 = vmatmul.mubr.msk.f32.gmra.mxu0 %vm390_vm13, %v2163_v45  ;;  %vm1268_vm13 = vcmask 1040384  }
  0xae   : > { %2083 = vmatprep.mubr.msk.f32.mxu0 %vm391_vm14, %v2163_v45  ;;  %v358_v60 = vpop.permute.xlu1 %357  ;;  %vm879_vm14 = vcmask 1044480  }
  0xaf   : > { %v355_v61 = vpop.permute.xlu0 %354  ;;  %vm394_vm1 = vcmp.eq.s32.totalorder %v358_v60, %v2297_v42 }
  0xb0   : > { %vm393_vm0 = vcmp.eq.s32.totalorder %v355_v61, %v2297_v42 }
  0xb1   : > { %2084 = vmatmul.mubr.msk.f32.gmra.mxu0 %vm392_vm15, %v2163_v45  ;;  %vm985_vm15 = vcmask 1043456  }
  0xb2   : > { %2086 = vmatprep.mubr.msk.f32.mxu0 %vm393_vm0, %v2163_v45  ;;  %v364_v62 = vpop.permute.xlu1 %363  ;;  %vm756_vm0 = vcmask 523520  }
  0xb3   : > { %v361_v63 = vpop.permute.xlu0 %360  ;;  %vm396_vm3 = vcmp.eq.s32.totalorder %v364_v62, %v2297_v42 }
  0xb4   : > { %vm395_vm2 = vcmp.eq.s32.totalorder %v361_v63, %v2297_v42  ;;  %v1405_v63 = vld [vmem:[%s3384_s2] sm:$0xff] }
  0xb5   : > { %2087 = vmatmul.mubr.msk.f32.gmra.mxu0 %vm394_vm1, %v2163_v45  ;;  %vm862_vm1 = vcmask 785920  }
  0xb6   : > { %2089 = vmatprep.mubr.msk.f32.mxu0 %vm395_vm2, %v2163_v45  ;;  %v370_v0 = vpop.permute.xlu1 %369  ;;  %vm968_vm2 = vcmask 1048320  }
  0xb7   : > { %v367_v1 = vpop.permute.xlu0 %366  ;;  %vm398_vm5 = vcmp.eq.s32.totalorder %v370_v0, %v2297_v42 }
  0xb8   : > { %vm397_vm4 = vcmp.eq.s32.totalorder %v367_v1, %v2297_v42 }
  0xb9   : > { %2090 = vmatmul.mubr.msk.f32.gmra.mxu0 %vm396_vm3, %v2163_v45  ;;  %vm2168_vm3 = vmmov 0  }
  0xba   : > { %2092 = vmatprep.mubr.msk.f32.mxu0 %vm397_vm4, %v2163_v45  ;;  %v376_v3 = vpop.permute.xlu1 %375  ;;  %vm1710_vm4 = vcmask 1041409  }
  0xbb   : > { %v373_v2 = vpop.permute.xlu0 %372  ;;  %vm400_vm7 = vcmp.eq.s32.totalorder %v376_v3, %v2297_v42 }
  0xbc   : > { %vm399_vm6 = vcmp.eq.s32.totalorder %v373_v2, %v2297_v42 }
  0xbd   : > { %2093 = vmatmul.mubr.msk.f32.gmra.mxu0 %vm398_vm5, %v2163_v45  ;;  %vm1712_vm5 = vcmask 1042434  }
  0xbe   : > { %2095 = vmatprep.mubr.msk.f32.mxu0 %vm399_vm6, %v2163_v45  ;;  %vm1714_vm6 = vcmask 1043459  }
  0xc1   : > { %2096 = vmatmul.mubr.msk.f32.gmra.mxu0 %vm400_vm7, %v2163_v45  ;;  %v1422_v45 = vld [vmem:[%s3384_s2 + $0x88] sm:$0xff]  ;;  %vm1716_vm7 = vcmask 1044484  }
  0xc2   : > { %1961 = vmatprep.subr.mxu1 %v1422_v45 }
  0xc3   : > { %1962 = vmatpush3.msra.mxu1 %v1406_v49 }
  0xc4   : > { %1963 = vmatprep.subr.mxu1 %v1421_v58 }
  0xc5   : > { %1964 = vmatpush3.msra.mxu1 %v1405_v63 }
 0x155   : > { %v2416_v27 = vpop.f32.mrf.mxu0 }
 0x156   : > { %628 = vst.msk [vmem:[#allocation2 + $0x10] sm:$0xff] %vm626_vm8, %v2416_v27  ;;  %v1060_v34 = vrot.slane %v2416_v27, 5  ;;  %v669_v36 = vrot.slane %v2416_v27, 1  ;;  %v1165_v47 = vrot.slane %v2416_v27, 6  ;;  %v775_v48 = vrot.slane %v2416_v27, 2 }
 0x157   : > { %v2426_v30 = vpop.f32.mrf.mxu0  ;;  %v1270_v50 = vrot.slane %v2416_v27, 7  ;;  %v881_v51 = vrot.slane %v2416_v27, 3  ;;  %v3397_v52 = vrot.slane %v2416_v27, 4 }
 0x158   : > { %v1059_v33 = vrot.slane %v2426_v30, 5  ;;  %v668_v35 = vrot.slane %v2426_v30, 1  ;;  %627 = vst.msk [vmem:[#allocation2] sm:$0xff] %vm626_vm8, %v2426_v30  ;;  %v1164_v38 = vrot.slane %v2426_v30, 6  ;;  %v774_v39 = vrot.slane %v2426_v30, 2 }
 0x159   : > { %v2440_v37 = vpop.f32.mrf.mxu0  ;;  %v1269_v42 = vrot.slane %v2426_v30, 7  ;;  %v880_v43 = vrot.slane %v2426_v30, 3  ;;  %v986_v57 = vrot.slane %v2426_v30, 4 }
 0x15a   : > { %v1061_v40 = vsel %vm1058_vm9, %v1059_v33, %v1060_v34  ;;  %v670_v41 = vsel %vm667_vm10, %v668_v35, %v669_v36  ;;  %629 = vst.msk [vmem:[#allocation2 + $0x20] sm:$0xff] %vm626_vm8, %v2440_v37  ;;  %v1166_v54 = vsel %vm1163_vm11, %v1164_v38, %v1165_v47  ;;  %v776_v55 = vsel %vm773_vm12, %v774_v39, %v775_v48 }
 0x15b   : > { %1099 = vrot.lane.b32.xlu0 %v1061_v40, %s2164_s14  ;;  %708 = vrot.lane.b32.xlu1 %v670_v41, %s2164_s14  ;;  %v2460_v46 = vpop.f32.mrf.mxu0  ;;  %v1271_v59 = vsel %vm1268_vm13, %v1269_v42, %v1270_v50  ;;  %v882_v60 = vsel %vm879_vm14, %v880_v43, %v881_v51  ;;  %v1064_v4 = vrot.slane %v2440_v37, 5  ;;  %v673_v6 = vrot.slane %v2440_v37, 1 }
 0x15c   : > { %v1062_v56 = vrot.slane %v2460_v46, 5  ;;  %v671_v61 = vrot.slane %v2460_v46, 1  ;;  %v1167_v62 = vrot.slane %v2460_v46, 6  ;;  %v777_v1 = vrot.slane %v2460_v46, 2 }
 0x15d   : > { %v2470_v53 = vpop.f32.mrf.mxu0  ;;  %v1272_v2 = vrot.slane %v2460_v46, 7  ;;  %v883_v3 = vrot.slane %v2460_v46, 3  ;;  %v1169_v7 = vrot.slane %v2440_v37, 6  ;;  %v779_v8 = vrot.slane %v2440_v37, 2 }
 0x15e   : > { %v1063_v10 = vsel %vm1058_vm9, %v1060_v34, %v1062_v56  ;;  %v672_v14 = vsel %vm667_vm10, %v669_v36, %v671_v61  ;;  %v1168_v15 = vsel %vm1163_vm11, %v1165_v47, %v1167_v62  ;;  %v778_v19 = vsel %vm773_vm12, %v775_v48, %v777_v1 }
 0x15f   : > { %1204 = vrot.lane.b32.xlu0 %v1166_v54, %s2165_s21  ;;  %814 = vrot.lane.b32.xlu1 %v776_v55, %s2165_s21  ;;  %v2488_v0 = vpop.f32.mrf.mxu0  ;;  %v1273_v20 = vsel %vm1268_vm13, %v1270_v50, %v1272_v2  ;;  %v884_v21 = vsel %vm879_vm14, %v881_v51, %v883_v3  ;;  %v1274_v22 = vrot.slane %v2440_v37, 7  ;;  %v885_v24 = vrot.slane %v2440_v37, 3 }
 0x160   : > { %v1065_v5 = vrot.slane %v2488_v0, 5  ;;  %630 = vst.msk [vmem:[#allocation2 + $0x30] sm:$0xff] %vm626_vm8, %v2488_v0  ;;  %v674_v11 = vrot.slane %v2488_v0, 1  ;;  %v1170_v12 = vrot.slane %v2488_v0, 6  ;;  %v780_v13 = vrot.slane %v2488_v0, 2 }
 0x161   : > { %v2500_v9 = vpop.f32.mrf.mxu0  ;;  %v1275_v16 = vrot.slane %v2488_v0, 7  ;;  %v886_v17 = vrot.slane %v2488_v0, 3  ;;  %v1067_v25 = vrot.slane %v2470_v53, 5  ;;  %v676_v26 = vrot.slane %v2470_v53, 1 }
 0x162   : > { %632 = vst.msk [vmem:[#allocation2 + $0x50] sm:$0xff] %vm626_vm8, %v2500_v9  ;;  %v2523_v23 = vsel %vm1058_vm9, %v1064_v4, %v1065_v5  ;;  %v2533_v29 = vsel %vm667_vm10, %v673_v6, %v674_v11  ;;  %v2536_v31 = vsel %vm1163_vm11, %v1169_v7, %v1170_v12  ;;  %v2539_v32 = vsel %vm773_vm12, %v779_v8, %v780_v13 }
 0x163   : > { %1309 = vrot.lane.b32.xlu0 %v1271_v59, %s2166_s22  ;;  %920 = vrot.lane.b32.xlu1 %v882_v60, %s2166_s22  ;;  %v2516_v18 = vpop.f32.mrf.mxu0  ;;  %v1172_v33 = vrot.slane %v2470_v53, 6  ;;  %v2543_v34 = vsel %vm1268_vm13, %v1274_v22, %v1275_v16  ;;  %v2546_v35 = vsel %vm879_vm14, %v885_v24, %v886_v17  ;;  %v2549_v36 = vsel %vm1058_vm9, %v1065_v5, %v1067_v25 }
 0x164   : > { %631 = vst.msk [vmem:[#allocation2 + $0x40] sm:$0xff] %vm626_vm8, %v2516_v18  ;;  %v782_v38 = vrot.slane %v2470_v53, 2  ;;  %v2559_v40 = vsel %vm667_vm10, %v674_v11, %v676_v26  ;;  %v1277_v42 = vrot.slane %v2470_v53, 7  ;;  %v888_v43 = vrot.slane %v2470_v53, 3 }
 0x165   : > { %v2530_v28 = vpop.f32.mrf.mxu0  ;;  %v2562_v41 = vsel %vm1163_vm11, %v1170_v12, %v1172_v33  ;;  %v1069_v45 = vrot.slane %v2516_v18, 5  ;;  %v1070_v47 = vrot.slane %v2500_v9, 5  ;;  %v678_v48 = vrot.slane %v2516_v18, 1 }
 0x166   : > { %633 = vst.msk [vmem:[#allocation2 + $0x60] sm:$0xff] %vm626_vm8, %v2530_v28  ;;  %v2567_v44 = vsel %vm773_vm12, %v780_v13, %v782_v38  ;;  %v1174_v50 = vrot.slane %v2516_v18, 6  ;;  %v784_v51 = vrot.slane %v2516_v18, 2  ;;  %v1279_v54 = vrot.slane %v2516_v18, 7 }
 0x167   : > { %1101 = vrot.lane.b32.xlu0 %v1063_v10, %s2164_s14  ;;  %710 = vrot.lane.b32.xlu1 %v672_v14, %s2164_s14  ;;  %v2556_v39 = vpop.f32.mrf.mxu0  ;;  %v890_v55 = vrot.slane %v2516_v18, 3  ;;  %v679_v56 = vrot.slane %v2500_v9, 1  ;;  %v1175_v58 = vrot.slane %v2500_v9, 6  ;;  %v3396_v62 = vrot.slane %v2500_v9, 2 }
 0x168   : > { %v1072_v59 = vrot.slane %v2556_v39, 5  ;;  %v681_v60 = vrot.slane %v2556_v39, 1  ;;  %v3395_v63 = vrot.slane %v2500_v9, 7  ;;  %v3394_v1 = vrot.slane %v2500_v9, 3 }
 0x169   : > { %v2572_v49 = vpop.f32.mrf.mxu0  ;;  %v1177_v2 = vrot.slane %v2556_v39, 6  ;;  %v2591_v3 = vsel %vm1268_vm13, %v1275_v16, %v1277_v42  ;;  %v2594_v4 = vsel %vm879_vm14, %v886_v17, %v888_v43  ;;  %v2597_v5 = vsel %vm1058_vm9, %v1069_v45, %v1070_v47 }
 0x16a   : > { %v2600_v6 = vsel %vm667_vm10, %v678_v48, %v679_v56  ;;  %v2607_v8 = vsel %vm1163_vm11, %v1174_v50, %v1175_v58  ;;  %v2612_v10 = vsel %vm773_vm12, %v784_v51, %v3396_v62  ;;  %v2617_v11 = vsel %vm1268_vm13, %v1279_v54, %v3395_v63 }
 0x16b   : > { %1206 = vrot.lane.b32.xlu0 %v1168_v15, %s2165_s21  ;;  %816 = vrot.lane.b32.xlu1 %v778_v19, %s2165_s21  ;;  %v2584_v61 = vpop.f32.mrf.mxu0  ;;  %v2622_v12 = vsel %vm879_vm14, %v890_v55, %v3394_v1  ;;  %v2625_v13 = vsel %vm1058_vm9, %v1070_v47, %v1072_v59  ;;  %v2628_v14 = vsel %vm667_vm10, %v679_v56, %v681_v60  ;;  %v895_v42 = vrot.slane %v2530_v28, 3 }
 0x16c   : > { %634 = vst.msk [vmem:[#allocation2 + $0x70] sm:$0xff] %vm626_vm8, %v2584_v61  ;;  %v2639_v19 = vsel %vm1163_vm11, %v1175_v58, %v1177_v2  ;;  %v3393_v24 = vrot.slane %v2584_v61, 5  ;;  %v3391_v25 = vrot.slane %v2584_v61, 1  ;;  %v3390_v26 = vrot.slane %v2584_v61, 6 }
 0x16d   : > { %v2604_v7 = vpop.f32.mrf.mxu0  ;;  %v3392_v33 = vrot.slane %v2584_v61, 2  ;;  %v896_v43 = vrot.slane %v2584_v61, 3  ;;  %v1077_v45 = vrot.slane %v2572_v49, 5  ;;  %v686_v47 = vrot.slane %v2572_v49, 1 }
 0x16e   : > { %636 = vst.msk [vmem:[#allocation2 + $0x90] sm:$0xff] %vm626_vm8, %v2604_v7  ;;  %v1182_v50 = vrot.slane %v2572_v49, 6  ;;  %v792_v51 = vrot.slane %v2572_v49, 2  ;;  %v1287_v54 = vrot.slane %v2572_v49, 7  ;;  %v1290_v1 = vrot.slane %v2604_v7, 7 }
 0x16f   : > { %1311 = vrot.lane.b32.xlu0 %v1273_v20, %s2166_s22  ;;  %922 = vrot.lane.b32.xlu1 %v884_v21, %s2166_s22  ;;  %v2636_v17 = vpop.f32.mrf.mxu0  ;;  %v1284_v20 = vrot.slane %v2530_v28, 7  ;;  %v1285_v21 = vrot.slane %v2584_v61, 7  ;;  %v2671_v56 = vsel %vm879_vm14, %v895_v42, %v896_v43  ;;  %v2676_v58 = vsel %vm1058_vm9, %v3393_v24, %v1077_v45 }
 0x170   : > { %635 = vst.msk [vmem:[#allocation2 + $0x80] sm:$0xff] %vm626_vm8, %v2636_v17  ;;  %v2681_v59 = vsel %vm667_vm10, %v3391_v25, %v686_v47  ;;  %v2692_v60 = vsel %vm773_vm12, %v3392_v33, %v792_v51  ;;  %v1080_v47 = vrot.slane %v2604_v7, 5  ;;  %v1184_v25 = vrot.slane %v2636_v17, 6 }
 0x171   : > { %v2650_v38 = vpop.f32.mrf.mxu0  ;;  %v2657_v48 = vsel %vm1268_vm13, %v1284_v20, %v1285_v21  ;;  %v2695_v2 = vsel %vm1268_vm13, %v1285_v21, %v1287_v54  ;;  %v1079_v20 = vrot.slane %v2636_v17, 5  ;;  %v1185_v51 = vrot.slane %v2604_v7, 6 }
 0x172   : > { %637 = vst.msk [vmem:[#allocation2 + $0xa0] sm:$0xff] %vm626_vm8, %v2650_v38  ;;  %v794_v21 = vrot.slane %v2636_v17, 2  ;;  %v795_v54 = vrot.slane %v2604_v7, 2  ;;  %v1289_v24 = vrot.slane %v2636_v17, 7  ;;  %v901_v63 = vrot.slane %v2604_v7, 3 }
 0x173   : > { %1103 = vrot.lane.b32.xlu0 %v2523_v23, %s2164_s14  ;;  %712 = vrot.lane.b32.xlu1 %v2533_v29, %s2164_s14  ;;  %v2668_v55 = vpop.f32.mrf.mxu0  ;;  %v898_v23 = vrot.slane %v2572_v49, 3  ;;  %v2687_v29 = vsel %vm1163_vm11, %v3390_v26, %v1182_v50  ;;  %v688_v50 = vrot.slane %v2636_v17, 1  ;;  %v689_v26 = vrot.slane %v2604_v7, 1 }
 0x174   : > { %v2725_v22 = vsel %vm1163_vm11, %v1184_v25, %v1185_v51  ;;  %v1082_v16 = vrot.slane %v2668_v55, 5  ;;  %v691_v25 = vrot.slane %v2668_v55, 1  ;;  %v1187_v62 = vrot.slane %v2668_v55, 6 }
 0x175   : > { %v2698_v42 = vpop.f32.mrf.mxu0  ;;  %v2701_v45 = vsel %vm879_vm14, %v896_v43, %v898_v23  ;;  %v2717_v23 = vsel %vm1058_vm9, %v1079_v20, %v1080_v47  ;;  %v2720_v33 = vsel %vm667_vm10, %v688_v50, %v689_v26  ;;  %v2737_v50 = vsel %vm1268_vm13, %v1289_v24, %v1290_v1 }
 0x176   : > { %3399 = vst [vmem:[#allocation4_spill] sm:$0xff] %v2737_v50  ;;  %v797_v15 = vrot.slane %v2668_v55, 2  ;;  %v988_v24 = vsel %vm985_vm15, %v986_v57, %v3397_v52  ;;  %v1292_v50 = vrot.slane %v2668_v55, 7  ;;  %v2767_v30 = vsel %vm1163_vm11, %v1185_v51, %v1187_v62 }
 0x177   : > { %1208 = vrot.lane.b32.xlu0 %v2536_v31, %s2165_s21  ;;  %818 = vrot.lane.b32.xlu1 %v2539_v32, %s2165_s21  ;;  %v2714_v43 = vpop.f32.mrf.mxu0  ;;  %v2728_v31 = vsel %vm773_vm12, %v794_v21, %v795_v54  ;;  %v900_v32 = vrot.slane %v2636_v17, 3  ;;  %3401 = vst [vmem:[#allocation6_spill] sm:$0xff] %v2767_v30  ;;  %1042 = vst.msk [vmem:[#allocation2 + $0x8] sm:$0xff] %vm626_vm8, %v988_v24  ;;  %v903_v57 = vrot.slane %v2668_v55, 3  ;;  %v693_v51 = vrot.slane %v2650_v38, 1 }
 0x178   : > { %3398 = vst [vmem:[#allocation3_spill] sm:$0xff] %v2728_v31  ;;  %638 = vst.msk [vmem:[#allocation2 + $0xb0] sm:$0xff] %vm626_vm8, %v2714_v43  ;;  %v2764_v31 = vsel %vm667_vm10, %v689_v26, %v691_v25  ;;  %v1085_v26 = vrot.slane %v2714_v43, 5  ;;  %v799_v25 = vrot.slane %v2650_v38, 2  ;;  %v800_v24 = vrot.slane %v2714_v43, 2 }
 0x179   : > { %v2734_v20 = vpop.f32.mrf.mxu0  ;;  %v2743_v21 = vsel %vm879_vm14, %v900_v32, %v901_v63  ;;  %v2784_v62 = vsel %vm879_vm14, %v901_v63, %v903_v57  ;;  %v1294_v52 = vrot.slane %v2650_v38, 7  ;;  %v1087_v30 = vrot.slane %v2698_v42, 5 }
 0x17a   : > { %3400 = vst [vmem:[#allocation5_spill] sm:$0xff] %v2743_v21  ;;  %640 = vst.msk [vmem:[#allocation2 + $0xd0] sm:$0xff] %vm626_vm8, %v2734_v20  ;;  %v2761_v21 = vsel %vm1058_vm9, %v1080_v47, %v1082_v16  ;;  %v1084_v16 = vrot.slane %v2650_v38, 5 }
 0x17b   : > { %1313 = vrot.lane.b32.xlu0 %v2543_v34, %s2166_s22  ;;  %924 = vrot.lane.b32.xlu1 %v2546_v35, %s2166_s22  ;;  %v2758_v32 = vpop.f32.mrf.mxu0  ;;  %v2772_v34 = vsel %vm773_vm12, %v795_v54, %v797_v15  ;;  %v2777_v35 = vsel %vm1268_vm13, %v1290_v1, %v1292_v50  ;;  %3404 = vst [vmem:[#allocation9_spill] sm:$0xff] %v2784_v62  ;;  %v694_v15 = vrot.slane %v2714_v43, 1  ;;  %v1189_v54 = vrot.slane %v2650_v38, 6 }
 0x17c   : > { %3402 = vst [vmem:[#allocation7_spill] sm:$0xff] %v2772_v34  ;;  %639 = vst.msk [vmem:[#allocation2 + $0xc0] sm:$0xff] %vm626_vm8, %v2758_v32  ;;  %v2792_v1 = vsel %vm1058_vm9, %v1084_v16, %v1085_v26  ;;  %v1190_v50 = vrot.slane %v2714_v43, 6  ;;  %v989_v16 = vrot.slane %v2460_v46, 4 }
 0x17d   : > { %3403 = vst [vmem:[#allocation8_spill] sm:$0xff] %v2777_v35  ;;  %v2781_v47 = vpop.f32.mrf.mxu0  ;;  %3405 = vst [vmem:[#allocation10_spill] sm:$0xff] %v2792_v1  ;;  %v2804_v57 = vsel %vm667_vm10, %v693_v51, %v694_v15  ;;  %v1295_v1 = vrot.slane %v2714_v43, 7  ;;  %v2813_v35 = vsel %vm773_vm12, %v799_v25, %v800_v24  ;;  %v3409_v51 = vrot.slane %v2416_v27, 4 }
 0x17e   : > { %641 = vst.msk [vmem:[#allocation2 + $0xe0] sm:$0xff] %vm626_vm8, %v2781_v47  ;;  %3406 = vst [vmem:[#allocation11_spill] sm:$0xff] %v2804_v57  ;;  %v2810_v62 = vsel %vm1163_vm11, %v1189_v54, %v1190_v50  ;;  %v696_v54 = vrot.slane %v2698_v42, 1  ;;  %v991_v27 = vrot.slane %v2440_v37, 4 }
 0x17f   : > { %1105 = vrot.lane.b32.xlu0 %v2549_v36, %s2164_s14  ;;  %714 = vrot.lane.b32.xlu1 %v2559_v40, %s2164_s14  ;;  %v2801_v63 = vpop.f32.mrf.mxu0  ;;  %3407 = vst [vmem:[#allocation12_spill] sm:$0xff] %v2810_v62  ;;  %3408 = vst [vmem:[#allocation13_spill] sm:$0xff] %v2813_v35  ;;  %v905_v36 = vrot.slane %v2650_v38, 3  ;;  %v906_v40 = vrot.slane %v2714_v43, 3  ;;  %v990_v46 = vsel %vm985_vm15, %v3409_v51, %v989_v16  ;;  %v1192_v35 = vrot.slane %v2698_v42, 6 }
 0x180   : > { %v2823_v57 = vsel %vm1268_vm13, %v1294_v52, %v1295_v1  ;;  %1043 = vst.msk [vmem:[#allocation2 + $0x18] sm:$0xff] %vm626_vm8, %v990_v46  ;;  %v802_v62 = vrot.slane %v2698_v42, 2  ;;  %v2841_v16 = vsel %vm1058_vm9, %v1085_v26, %v1087_v30  ;;  %v992_v51 = vrot.slane %v2488_v0, 4 }
 0x181   : > { %v2817_v34 = vpop.f32.mrf.mxu0  ;;  %v2829_v25 = vsel %vm879_vm14, %v905_v36, %v906_v40  ;;  %v2844_v36 = vsel %vm667_vm10, %v694_v15, %v696_v54  ;;  %v1297_v46 = vrot.slane %v2698_v42, 7  ;;  %v2851_v37 = vsel %vm1163_vm11, %v1190_v50, %v1192_v35 }
 0x182   : > { %v1089_v30 = vrot.slane %v2758_v32, 5  ;;  %v993_v26 = vsel %vm985_vm15, %v991_v27, %v992_v51  ;;  %v1090_v0 = vrot.slane %v2734_v20, 5  ;;  %v698_v54 = vrot.slane %v2758_v32, 1 }
 0x183   : > { %1210 = vrot.lane.b32.xlu0 %v2562_v41, %s2165_s21  ;;  %820 = vrot.lane.b32.xlu1 %v2567_v44, %s2165_s21  ;;  %v2838_v52 = vpop.f32.mrf.mxu0  ;;  %v2854_v41 = vsel %vm773_vm12, %v800_v24, %v802_v62  ;;  %v908_v44 = vrot.slane %v2698_v42, 3  ;;  %v2860_v15 = vsel %vm1268_vm13, %v1295_v1, %v1297_v46  ;;  %1044 = vst.msk [vmem:[#allocation2 + $0x28] sm:$0xff] %vm626_vm8, %v993_v26  ;;  %v699_v62 = vrot.slane %v2734_v20, 1 }
 0x184   : > { %642 = vst.msk [vmem:[#allocation2 + $0xf0] sm:$0xff] %vm626_vm8, %v2838_v52  ;;  %3410 = vst [vmem:[#allocation14_spill] sm:$0xff] %v2860_v15  ;;  %v1194_v50 = vrot.slane %v2758_v32, 6  ;;  %v1195_v24 = vrot.slane %v2734_v20, 6  ;;  %v2876_v1 = vsel %vm1058_vm9, %v1089_v30, %v1090_v0  ;;  %v804_v27 = vrot.slane %v2758_v32, 2 }
 0x185   : > { %v2866_v35 = vsel %vm879_vm14, %v906_v40, %v908_v44  ;;  %3412 = vst [vmem:[#allocation16_spill] sm:$0xff] %v2876_v1  ;;  %v805_v40 = vrot.slane %v2734_v20, 2  ;;  %v994_v46 = vrot.slane %v2470_v53, 4  ;;  %v2882_v44 = vsel %vm667_vm10, %v698_v54, %v699_v62 }
 0x186   : > { %3411 = vst [vmem:[#allocation15_spill] sm:$0xff] %v2866_v35  ;;  %v2885_v26 = vsel %vm1163_vm11, %v1194_v50, %v1195_v24  ;;  %v1300_v35 = vrot.slane %v2734_v20, 7  ;;  %v910_v1 = vrot.slane %v2758_v32, 3  ;;  %v911_v15 = vrot.slane %v2734_v20, 3 }
 0x187   : > { %1315 = vrot.lane.b32.xlu0 %v2591_v3, %s2166_s22  ;;  %926 = vrot.lane.b32.xlu1 %v2594_v4, %s2166_s22  ;;  %3413 = vst [vmem:[#allocation17_spill] sm:$0xff] %v2885_v26  ;;  %v1299_v3 = vrot.slane %v2758_v32, 7  ;;  %v2890_v4 = vsel %vm773_vm12, %v804_v27, %v805_v40  ;;  %v995_v30 = vsel %vm985_vm15, %v992_v51, %v994_v46  ;;  %v1092_v54 = vrot.slane %v2801_v63, 5 }
 0x188   : > { %3414 = vst [vmem:[#allocation18_spill] sm:$0xff] %v2890_v4  ;;  %1045 = vst.msk [vmem:[#allocation2 + $0x38] sm:$0xff] %vm626_vm8, %v995_v30  ;;  %v701_v50 = vrot.slane %v2801_v63, 1  ;;  %v1197_v26 = vrot.slane %v2801_v63, 6  ;;  %v2907_v51 = vsel %vm879_vm14, %v910_v1, %v911_v15  ;;  %v807_v27 = vrot.slane %v2801_v63, 2 }
 0x189   : > { %v2897_v53 = vsel %vm1268_vm13, %v1299_v3, %v1300_v35  ;;  %3416 = vst [vmem:[#allocation20_spill] sm:$0xff] %v2907_v51  ;;  %v996_v46 = vrot.slane %v2516_v18, 4  ;;  %v997_v3 = vrot.slane %v2500_v9, 4  ;;  %v2913_v30 = vsel %vm1058_vm9, %v1090_v0, %v1092_v54 }
 0x18a   : > { %3415 = vst [vmem:[#allocation19_spill] sm:$0xff] %v2897_v53  ;;  %v2916_v53 = vsel %vm667_vm10, %v699_v62, %v701_v50  ;;  %v2923_v1 = vsel %vm773_vm12, %v805_v40, %v807_v27  ;;  %v913_v18 = vrot.slane %v2801_v63, 3  ;;  %v1094_v4 = vrot.slane %v2781_v47, 5 }
 0x18b   : > { %1107 = vrot.lane.b32.xlu0 %v2597_v5, %s2164_s14  ;;  %716 = vrot.lane.b32.xlu1 %v2600_v6, %s2164_s14  ;;  %v2919_v5 = vsel %vm1163_vm11, %v1195_v24, %v1197_v26  ;;  %v1302_v6 = vrot.slane %v2801_v63, 7  ;;  %v998_v51 = vsel %vm985_vm15, %v996_v46, %v997_v3  ;;  %v1095_v62 = vrot.slane %v2838_v52, 5 }
 0x18c   : > { %1046 = vst.msk [vmem:[#allocation2 + $0x48] sm:$0xff] %vm626_vm8, %v998_v51  ;;  %v703_v24 = vrot.slane %v2781_v47, 1  ;;  %v704_v26 = vrot.slane %v2838_v52, 1  ;;  %v2940_v40 = vsel %vm879_vm14, %v911_v15, %v913_v18  ;;  %v1199_v54 = vrot.slane %v2781_v47, 6 }
 0x18d   : > { %v2930_v0 = vsel %vm1268_vm13, %v1300_v35, %v1302_v6  ;;  %3417 = vst [vmem:[#allocation21_spill] sm:$0xff] %v2940_v40  ;;  %v1200_v35 = vrot.slane %v2838_v52, 6  ;;  %v809_v50 = vrot.slane %v2781_v47, 2  ;;  %v2946_v51 = vsel %vm1058_vm9, %v1094_v4, %v1095_v62 }
 0x18e   : > { %3418 = vst [vmem:[#allocation22_spill] sm:$0xff] %v2946_v51  ;;  %v2949_v27 = vsel %vm667_vm10, %v703_v24, %v704_v26  ;;  %v999_v46 = vrot.slane %v2556_v39, 4  ;;  %v1304_v15 = vrot.slane %v2781_v47, 7  ;;  %v1305_v6 = vrot.slane %v2838_v52, 7 }
 0x18f   : > { %1212 = vrot.lane.b32.xlu0 %v2607_v8, %s2165_s21  ;;  %822 = vrot.lane.b32.xlu1 %v2612_v10, %s2165_s21  ;;  %3419 = vst [vmem:[#allocation23_spill] sm:$0xff] %v2949_v27  ;;  %v810_v8 = vrot.slane %v2838_v52, 2  ;;  %v2954_v10 = vsel %vm1163_vm11, %v1199_v54, %v1200_v35  ;;  %v915_v18 = vrot.slane %v2781_v47, 3  ;;  %v916_v24 = vrot.slane %v2838_v52, 3 }
 0x190   : > { %3420 = vst [vmem:[#allocation24_spill] sm:$0xff] %v2954_v10  ;;  %v1000_v4 = vsel %vm985_vm15, %v997_v3, %v999_v46  ;;  %v1097_v27 = vrot.slane %v2817_v34, 5  ;;  %v2971_v54 = vsel %vm1268_vm13, %v1304_v15, %v1305_v6  ;;  %v812_v3 = vrot.slane %v2817_v34, 2 }
 0x191   : > { %v2960_v40 = vsel %vm773_vm12, %v809_v50, %v810_v8  ;;  %1047 = vst.msk [vmem:[#allocation2 + $0x58] sm:$0xff] %vm626_vm8, %v1000_v4  ;;  %3422 = vst [vmem:[#allocation26_spill] sm:$0xff] %v2971_v54  ;;  %v706_v50 = vrot.slane %v2817_v34, 1  ;;  %v2977_v46 = vsel %vm879_vm14, %v915_v18, %v916_v24  ;;  %v1307_v51 = vrot.slane %v2817_v34, 7 }
 0x192   : > { %3421 = vst [vmem:[#allocation25_spill] sm:$0xff] %v2960_v40  ;;  %v1202_v40 = vrot.slane %v2817_v34, 6  ;;  %v2980_v10 = vsel %vm1058_vm9, %v1095_v62, %v1097_v27  ;;  %v2991_v54 = vsel %vm773_vm12, %v810_v8, %v812_v3  ;;  %v918_v62 = vrot.slane %v2817_v34, 3 }
 0x193   : > { %1317 = vrot.lane.b32.xlu0 %v2617_v11, %s2166_s22  ;;  %928 = vrot.lane.b32.xlu1 %v2622_v12, %s2166_s22  ;;  %3423 = vst [vmem:[#allocation27_spill] sm:$0xff] %v2980_v10  ;;  %v1001_v11 = vrot.slane %v2530_v28, 4  ;;  %v1002_v12 = vrot.slane %v2584_v61, 4  ;;  %v2985_v4 = vsel %vm667_vm10, %v704_v26, %v706_v50  ;;  %v1004_v27 = vrot.slane %v2572_v49, 4 }
 0x194   : > { %v2988_v15 = vsel %vm1163_vm11, %v1200_v35, %v1202_v40  ;;  %v1006_v10 = vrot.slane %v2636_v17, 4  ;;  %v3004_v26 = vsel %vm1268_vm13, %v1305_v6, %v1307_v51  ;;  %v1007_v40 = vrot.slane %v2604_v7, 4 }
 0x195   : > { %v1003_v18 = vsel %vm985_vm15, %v1001_v11, %v1002_v12  ;;  %v1009_v35 = vrot.slane %v2668_v55, 4  ;;  %v1011_v8 = vrot.slane %v2650_v38, 4  ;;  %v3010_v49 = vsel %vm879_vm14, %v916_v24, %v918_v62 }
 0x196   : > { %1048 = vst.msk [vmem:[#allocation2 + $0x68] sm:$0xff] %vm626_vm8, %v1003_v18  ;;  %v1005_v17 = vsel %vm985_vm15, %v1002_v12, %v1004_v27  ;;  %v1008_v51 = vsel %vm985_vm15, %v1006_v10, %v1007_v40  ;;  %v1016_v7 = vrot.slane %v2758_v32, 4  ;;  %v1017_v55 = vrot.slane %v2734_v20, 4 }
 0x197   : > { %1109 = vrot.lane.b32.xlu0 %v2625_v13, %s2164_s14  ;;  %718 = vrot.lane.b32.xlu1 %v2628_v14, %s2164_s14  ;;  %v1012_v13 = vrot.slane %v2714_v43, 4  ;;  %v1014_v14 = vrot.slane %v2698_v42, 4  ;;  %1049 = vst.msk [vmem:[#allocation2 + $0x78] sm:$0xff] %vm626_vm8, %v1005_v17  ;;  %v1010_v6 = vsel %vm985_vm15, %v1007_v40, %v1009_v35  ;;  %v3424_v38 = vrot.slane %v2556_v39, 2  ;;  %1050 = vst.msk [vmem:[#allocation2 + $0x88] sm:$0xff] %vm626_vm8, %v1008_v51 }
 0x198   : > { %v3425_v24 = vrot.slane %v2500_v9, 2  ;;  %1051 = vst.msk [vmem:[#allocation2 + $0x98] sm:$0xff] %vm626_vm8, %v1010_v6  ;;  %v1019_v10 = vrot.slane %v2801_v63, 4  ;;  %v1018_v20 = vsel %vm985_vm15, %v1016_v7, %v1017_v55  ;;  %v1021_v32 = vrot.slane %v2781_v47, 4 }
 0x199   : > { %v1013_v42 = vsel %vm985_vm15, %v1011_v8, %v1012_v13  ;;  %v1015_v43 = vsel %vm985_vm15, %v1012_v13, %v1014_v14  ;;  %v1022_v3 = vrot.slane %v2838_v52, 4  ;;  %v1024_v11 = vrot.slane %v2817_v34, 4  ;;  %1054 = vst.msk [vmem:[#allocation2 + $0xc8] sm:$0xff] %vm626_vm8, %v1018_v20 }
 0x19a   : > { %v788_v50 = vsel %vm773_vm12, %v3425_v24, %v3424_v38  ;;  %1052 = vst.msk [vmem:[#allocation2 + $0xa8] sm:$0xff] %vm626_vm8, %v1013_v42  ;;  %1053 = vst.msk [vmem:[#allocation2 + $0xb8] sm:$0xff] %vm626_vm8, %v1015_v43  ;;  %v1020_v63 = vsel %vm985_vm15, %v1017_v55, %v1019_v10  ;;  %v3426_v18 = vrot.slane %v2556_v39, 7  ;;  %v3427_v62 = vrot.slane %v2500_v9, 7  ;;  %v3443_v38 = vld [vmem:[#allocation12_spill] sm:$0xff]  ;;  %v3444_v24 = vld [vmem:[#allocation13_spill] sm:$0xff] }
 0x19b   : > { %1214 = vrot.lane.b32.xlu0 %v2639_v19, %s2165_s21  ;;  %824 = vrot.lane.b32.xlu1 %v788_v50, %s2165_s21  ;;  %1055 = vst.msk [vmem:[#allocation2 + $0xd8] sm:$0xff] %vm626_vm8, %v1020_v63  ;;  %v1023_v19 = vsel %vm985_vm15, %v1021_v32, %v1022_v3  ;;  %v1025_v12 = vsel %vm985_vm15, %v1022_v3, %v1024_v11  ;;  %v3428_v52 = vrot.slane %v2556_v39, 3  ;;  %v3429_v34 = vrot.slane %v2500_v9, 3 }
 0x19c   : > { %v1283_v47 = vsel %vm1268_vm13, %v3427_v62, %v3426_v18  ;;  %1056 = vst.msk [vmem:[#allocation2 + $0xe8] sm:$0xff] %vm626_vm8, %v1023_v19  ;;  %1057 = vst.msk [vmem:[#allocation2 + $0xf8] sm:$0xff] %vm626_vm8, %v1025_v12  ;;  %v1074_v40 = vrot.slane %v2530_v28, 5  ;;  %v683_v35 = vrot.slane %v2530_v28, 1  ;;  %v3430_v8 = vrot.slane %v2584_v61, 5 }
 0x19d   : > { %v894_v27 = vsel %vm879_vm14, %v3429_v34, %v3428_v52  ;;  %v3431_v9 = vrot.slane %v2584_v61, 1  ;;  %v1179_v13 = vrot.slane %v2530_v28, 6  ;;  %v789_v14 = vrot.slane %v2530_v28, 2  ;;  %v3434_v28 = vld [vmem:[#allocation3_spill] sm:$0xff]  ;;  %v3449_v52 = vld [vmem:[#allocation18_spill] sm:$0xff] }
 0x19e   : > { %v1076_v39 = vsel %vm1058_vm9, %v1074_v40, %v3430_v8  ;;  %v3432_v51 = vrot.slane %v2584_v61, 6  ;;  %v3433_v7 = vrot.slane %v2584_v61, 2  ;;  %v3435_v61 = vld [vmem:[#allocation4_spill] sm:$0xff]  ;;  %vm1718_vm8 = vcmask 1045509  }
 0x19f   : > { %1319 = vrot.lane.b32.xlu0 %v1283_v47, %s2166_s22  ;;  %930 = vrot.lane.b32.xlu1 %v894_v27, %s2166_s22  ;;  %v685_v17 = vsel %vm667_vm10, %v683_v35, %v3431_v9  ;;  %v3448_v47 = vld [vmem:[#allocation17_spill] sm:$0xff]  ;;  %v3451_v40 = vld [vmem:[#allocation20_spill] sm:$0xff]  ;;  %vm1720_vm9 = vcmask 1046534   ;;  %vm1722_vm10 = vcmask 1047559  }
 0x1a0   : > { %v1181_v6 = vsel %vm1163_vm11, %v1179_v13, %v3432_v51  ;;  %v791_v55 = vsel %vm773_vm12, %v789_v14, %v3433_v7 }
 0x1a3   : > { %1111 = vrot.lane.b32.xlu0 %v1076_v39, %s2164_s14  ;;  %720 = vrot.lane.b32.xlu1 %v685_v17, %s2164_s14 }
 0x1a7   : > { %1216 = vrot.lane.b32.xlu0 %v1181_v6, %s2165_s21  ;;  %826 = vrot.lane.b32.xlu1 %v791_v55, %s2165_s21 }
 0x1ab   : > { %1321 = vrot.lane.b32.xlu0 %v2657_v48, %s2166_s22  ;;  %932 = vrot.lane.b32.xlu1 %v2671_v56, %s2166_s22  ;;  %v3436_v48 = vld [vmem:[#allocation5_spill] sm:$0xff] }
 0x1af   : > { %1113 = vrot.lane.b32.xlu0 %v2676_v58, %s2164_s14  ;;  %722 = vrot.lane.b32.xlu1 %v2681_v59, %s2164_s14  ;;  %v3439_v59 = vld [vmem:[#allocation8_spill] sm:$0xff] }
 0x1b3   : > { %1218 = vrot.lane.b32.xlu0 %v2687_v29, %s2165_s21  ;;  %828 = vrot.lane.b32.xlu1 %v2692_v60, %s2165_s21  ;;  %v3440_v29 = vld [vmem:[#allocation9_spill] sm:$0xff] }
 0x1b7   : > { %1323 = vrot.lane.b32.xlu0 %v2695_v2, %s2166_s22  ;;  %934 = vrot.lane.b32.xlu1 %v2701_v45, %s2166_s22  ;;  %v3441_v45 = vld [vmem:[#allocation10_spill] sm:$0xff] }
 0x1bb   : > { %1115 = vrot.lane.b32.xlu0 %v2717_v23, %s2164_s14  ;;  %724 = vrot.lane.b32.xlu1 %v2720_v33, %s2164_s14  ;;  %v3437_v33 = vld [vmem:[#allocation6_spill] sm:$0xff]  ;;  %v3442_v23 = vld [vmem:[#allocation11_spill] sm:$0xff] }
 0x1bf   : > { %1220 = vrot.lane.b32.xlu0 %v2725_v22, %s2165_s21  ;;  %830 = vrot.lane.b32.xlu1 %v3434_v28, %s2165_s21  ;;  %v3438_v22 = vld [vmem:[#allocation7_spill] sm:$0xff] }
 0x1c3   : > { %1325 = vrot.lane.b32.xlu0 %v3435_v61, %s2166_s22  ;;  %936 = vrot.lane.b32.xlu1 %v3436_v48, %s2166_s22  ;;  %v3455_v61 = vld [vmem:[#allocation24_spill] sm:$0xff]  ;;  %v3456_v48 = vld [vmem:[#allocation25_spill] sm:$0xff] }
 0x1c7   : > { %1117 = vrot.lane.b32.xlu0 %v2761_v21, %s2164_s14  ;;  %726 = vrot.lane.b32.xlu1 %v2764_v31, %s2164_s14 }
 0x1cb   : > { %1222 = vrot.lane.b32.xlu0 %v3437_v33, %s2165_s21  ;;  %832 = vrot.lane.b32.xlu1 %v3438_v22, %s2165_s21 }
 0x1cd   : > { %v709_v56 = vpop.permute.xlu1 %708  ;;  %v1100_v58 = vpop.permute.xlu0 %1099 }
 0x1ce   : > { %757 = vst.msk [vmem:[#allocation2] sm:$0xff] %vm756_vm0, %v709_v56  ;;  %1147 = vst.msk [vmem:[#allocation2 + $0x8] sm:$0xff] %vm756_vm0, %v1100_v58  ;;  %v3457_v56 = vld [vmem:[#allocation26_spill] sm:$0xff] }
 0x1cf   : > { %1327 = vrot.lane.b32.xlu0 %v3439_v59, %s2166_s22  ;;  %938 = vrot.lane.b32.xlu1 %v3440_v29, %s2166_s22 }
 0x1d1   : > { %v815_v60 = vpop.permute.xlu1 %814  ;;  %v1205_v2 = vpop.permute.xlu0 %1204 }
 0x1d2   : > { %863 = vst.msk [vmem:[#allocation2] sm:$0xff] %vm862_vm1, %v815_v60  ;;  %1252 = vst.msk [vmem:[#allocation2 + $0x8] sm:$0xff] %vm862_vm1, %v1205_v2  ;;  %v3458_v2 = vld [vmem:[#allocation27_spill] sm:$0xff] }
 0x1d3   : > { %1119 = vrot.lane.b32.xlu0 %v3441_v45, %s2164_s14  ;;  %728 = vrot.lane.b32.xlu1 %v3442_v23, %s2164_s14 }
 0x1d5   : > { %v921_v31 = vpop.permute.xlu1 %920  ;;  %v1310_v21 = vpop.permute.xlu0 %1309 }
 0x1d6   : > { %969 = vst.msk [vmem:[#allocation2] sm:$0xff] %vm968_vm2, %v921_v31  ;;  %1357 = vst.msk [vmem:[#allocation2 + $0x8] sm:$0xff] %vm968_vm2, %v1310_v21 }
 0x1d7   : > { %1224 = vrot.lane.b32.xlu0 %v3443_v38, %s2165_s21  ;;  %834 = vrot.lane.b32.xlu1 %v3444_v24, %s2165_s21 }
 0x1d9   : > { %v711_v50 = vpop.permute.xlu1 %710  ;;  %v1102_v42 = vpop.permute.xlu0 %1101 }
 0x1da   : > { %758 = vst.msk [vmem:[#allocation2 + $0x10] sm:$0xff] %vm756_vm0, %v711_v50  ;;  %1148 = vst.msk [vmem:[#allocation2 + $0x18] sm:$0xff] %vm756_vm0, %v1102_v42 }
 0x1db   : > { %1329 = vrot.lane.b32.xlu0 %v2823_v57, %s2166_s22  ;;  %940 = vrot.lane.b32.xlu1 %v2829_v25, %s2166_s22 }
 0x1dd   : > { %v817_v43 = vpop.permute.xlu1 %816  ;;  %v1207_v10 = vpop.permute.xlu0 %1206  ;;  %v1374_v20 = vld [vmem:[#allocation2 + $0x8] sm:$0xff]  ;;  %v1373_v32 = vld [vmem:[#allocation2] sm:$0xff] }
 0x1de   : > { %864 = vst.msk [vmem:[#allocation2 + $0x10] sm:$0xff] %vm862_vm1, %v817_v43  ;;  %1253 = vst.msk [vmem:[#allocation2 + $0x18] sm:$0xff] %vm862_vm1, %v1207_v10  ;;  %1508 = vmatprep.mubr.f32.mxu1 %v1374_v20 }
 0x1df   : > { %1121 = vrot.lane.b32.xlu0 %v2841_v16, %s2164_s14  ;;  %730 = vrot.lane.b32.xlu1 %v2844_v36, %s2164_s14  ;;  %v3445_v16 = vld [vmem:[#allocation14_spill] sm:$0xff]  ;;  %v3446_v36 = vld [vmem:[#allocation15_spill] sm:$0xff] }
 0x1e0   : > { %1509 = vmatmul.mubr.f32.vlgmr.msra.gmra.mxu1 %v1373_v32 }
 0x1e1   : > { %v923_v57 = vpop.permute.xlu1 %922  ;;  %v1312_v3 = vpop.permute.xlu0 %1311 }
 0x1e2   : > { %970 = vst.msk [vmem:[#allocation2 + $0x10] sm:$0xff] %vm968_vm2, %v923_v57  ;;  %1358 = vst.msk [vmem:[#allocation2 + $0x18] sm:$0xff] %vm968_vm2, %v1312_v3 }
 0x1e3   : > { %1226 = vrot.lane.b32.xlu0 %v2851_v37, %s2165_s21  ;;  %836 = vrot.lane.b32.xlu1 %v2854_v41, %s2165_s21  ;;  %v3447_v37 = vld [vmem:[#allocation16_spill] sm:$0xff] }
 0x1e5   : > { %v713_v25 = vpop.permute.xlu1 %712  ;;  %v1104_v11 = vpop.permute.xlu0 %1103 }
 0x1e6   : > { %759 = vst.msk [vmem:[#allocation2 + $0x20] sm:$0xff] %vm756_vm0, %v713_v25  ;;  %1149 = vst.msk [vmem:[#allocation2 + $0x28] sm:$0xff] %vm756_vm0, %v1104_v11 }
 0x1e7   : > { %1331 = vrot.lane.b32.xlu0 %v3445_v16, %s2166_s22  ;;  %942 = vrot.lane.b32.xlu1 %v3446_v36, %s2166_s22 }
 0x1e9   : > { %v819_v63 = vpop.permute.xlu1 %818  ;;  %v1209_v19 = vpop.permute.xlu0 %1208  ;;  %v1376_v12 = vld [vmem:[#allocation2 + $0x18] sm:$0xff]  ;;  %v1375_v18 = vld [vmem:[#allocation2 + $0x10] sm:$0xff] }
 0x1ea   : > { %865 = vst.msk [vmem:[#allocation2 + $0x20] sm:$0xff] %vm862_vm1, %v819_v63  ;;  %1254 = vst.msk [vmem:[#allocation2 + $0x28] sm:$0xff] %vm862_vm1, %v1209_v19  ;;  %1513 = vmatprep.mubr.f32.mxu1 %v1376_v12 }
 0x1eb   : > { %1123 = vrot.lane.b32.xlu0 %v3447_v37, %s2164_s14  ;;  %732 = vrot.lane.b32.xlu1 %v2882_v44, %s2164_s14  ;;  %v3450_v44 = vld [vmem:[#allocation19_spill] sm:$0xff] }
 0x1ec   : > { %1514 = vmatmul.mubr.f32.gmra.mxu1 %v1375_v18 }
 0x1ed   : > { %v925_v41 = vpop.permute.xlu1 %924  ;;  %v1314_v62 = vpop.permute.xlu0 %1313 }
 0x1ee   : > { %971 = vst.msk [vmem:[#allocation2 + $0x20] sm:$0xff] %vm968_vm2, %v925_v41  ;;  %1359 = vst.msk [vmem:[#allocation2 + $0x28] sm:$0xff] %vm968_vm2, %v1314_v62 }
 0x1ef   : > { %1228 = vrot.lane.b32.xlu0 %v3448_v47, %s2165_s21  ;;  %838 = vrot.lane.b32.xlu1 %v3449_v52, %s2165_s21 }
 0x1f1   : > { %v715_v34 = vpop.permute.xlu1 %714  ;;  %v1106_v27 = vpop.permute.xlu0 %1105 }
 0x1f2   : > { %760 = vst.msk [vmem:[#allocation2 + $0x30] sm:$0xff] %vm756_vm0, %v715_v34  ;;  %1150 = vst.msk [vmem:[#allocation2 + $0x38] sm:$0xff] %vm756_vm0, %v1106_v27 }
 0x1f3   : > { %1333 = vrot.lane.b32.xlu0 %v3450_v44, %s2166_s22  ;;  %944 = vrot.lane.b32.xlu1 %v3451_v40, %s2166_s22 }
 0x1f5   : > { %v821_v35 = vpop.permute.xlu1 %820  ;;  %v1211_v8 = vpop.permute.xlu0 %1210  ;;  %v1378_v39 = vld [vmem:[#allocation2 + $0x28] sm:$0xff]  ;;  %v1377_v9 = vld [vmem:[#allocation2 + $0x20] sm:$0xff] }
 0x1f6   : > { %866 = vst.msk [vmem:[#allocation2 + $0x30] sm:$0xff] %vm862_vm1, %v821_v35  ;;  %1255 = vst.msk [vmem:[#allocation2 + $0x38] sm:$0xff] %vm862_vm1, %v1211_v8  ;;  %1518 = vmatprep.mubr.f32.mxu1 %v1378_v39 }
 0x1f7   : > { %1125 = vrot.lane.b32.xlu0 %v2913_v30, %s2164_s14  ;;  %734 = vrot.lane.b32.xlu1 %v2916_v53, %s2164_s14  ;;  %v3452_v53 = vld [vmem:[#allocation21_spill] sm:$0xff] }
 0x1f8   : > { %1519 = vmatmul.mubr.f32.gmra.mxu1 %v1377_v9 }
 0x1f9   : > { %v927_v17 = vpop.permute.xlu1 %926  ;;  %v1316_v13 = vpop.permute.xlu0 %1315 }
 0x1fa   : > { %972 = vst.msk [vmem:[#allocation2 + $0x30] sm:$0xff] %vm968_vm2, %v927_v17  ;;  %1360 = vst.msk [vmem:[#allocation2 + $0x38] sm:$0xff] %vm968_vm2, %v1316_v13 }
 0x1fb   : > { %1230 = vrot.lane.b32.xlu0 %v2919_v5, %s2165_s21  ;;  %840 = vrot.lane.b32.xlu1 %v2923_v1, %s2165_s21  ;;  %v3453_v5 = vld [vmem:[#allocation22_spill] sm:$0xff]  ;;  %v3454_v1 = vld [vmem:[#allocation23_spill] sm:$0xff] }
 0x1fd   : > { %v717_v14 = vpop.permute.xlu1 %716  ;;  %v1108_v51 = vpop.permute.xlu0 %1107 }
 0x1fe   : > { %761 = vst.msk [vmem:[#allocation2 + $0x40] sm:$0xff] %vm756_vm0, %v717_v14  ;;  %1151 = vst.msk [vmem:[#allocation2 + $0x48] sm:$0xff] %vm756_vm0, %v1108_v51 }
 0x1ff   : > { %1335 = vrot.lane.b32.xlu0 %v2930_v0, %s2166_s22  ;;  %946 = vrot.lane.b32.xlu1 %v3452_v53, %s2166_s22 }
 0x201   : > { %v823_v30 = vpop.permute.xlu1 %822  ;;  %v1213_v6 = vpop.permute.xlu0 %1212  ;;  %v1380_v7 = vld [vmem:[#allocation2 + $0x38] sm:$0xff]  ;;  %v1379_v55 = vld [vmem:[#allocation2 + $0x30] sm:$0xff] }
 0x202   : > { %867 = vst.msk [vmem:[#allocation2 + $0x40] sm:$0xff] %vm862_vm1, %v823_v30  ;;  %1256 = vst.msk [vmem:[#allocation2 + $0x48] sm:$0xff] %vm862_vm1, %v1213_v6  ;;  %1523 = vmatprep.mubr.f32.mxu1 %v1380_v7 }
 0x203   : > { %1127 = vrot.lane.b32.xlu0 %v3453_v5, %s2164_s14  ;;  %736 = vrot.lane.b32.xlu1 %v3454_v1, %s2164_s14 }
 0x204   : > { %1524 = vmatmul.mubr.f32.gmra.mxu1 %v1379_v55 }
 0x205   : > { %v929_v0 = vpop.permute.xlu1 %928  ;;  %v1318_v28 = vpop.permute.xlu0 %1317 }
 0x206   : > { %973 = vst.msk [vmem:[#allocation2 + $0x40] sm:$0xff] %vm968_vm2, %v929_v0  ;;  %1361 = vst.msk [vmem:[#allocation2 + $0x48] sm:$0xff] %vm968_vm2, %v1318_v28 }
 0x207   : > { %1232 = vrot.lane.b32.xlu0 %v3455_v61, %s2165_s21  ;;  %842 = vrot.lane.b32.xlu1 %v3456_v48, %s2165_s21 }
 0x209   : > { %v719_v33 = vpop.permute.xlu1 %718  ;;  %v1110_v22 = vpop.permute.xlu0 %1109 }
 0x20a   : > { %762 = vst.msk [vmem:[#allocation2 + $0x50] sm:$0xff] %vm756_vm0, %v719_v33  ;;  %1152 = vst.msk [vmem:[#allocation2 + $0x58] sm:$0xff] %vm756_vm0, %v1110_v22 }
 0x20b   : > { %1337 = vrot.lane.b32.xlu0 %v3457_v56, %s2166_s22  ;;  %948 = vrot.lane.b32.xlu1 %v2977_v46, %s2166_s22 }
 0x20d   : > { %v825_v58 = vpop.permute.xlu1 %824  ;;  %v1215_v59 = vpop.permute.xlu0 %1214  ;;  %v1382_v29 = vld [vmem:[#allocation2 + $0x48] sm:$0xff]  ;;  %v1381_v60 = vld [vmem:[#allocation2 + $0x40] sm:$0xff] }
 0x20e   : > { %868 = vst.msk [vmem:[#allocation2 + $0x50] sm:$0xff] %vm862_vm1, %v825_v58  ;;  %1257 = vst.msk [vmem:[#allocation2 + $0x58] sm:$0xff] %vm862_vm1, %v1215_v59  ;;  %1528 = vmatprep.mubr.f32.mxu1 %v1382_v29 }
 0x20f   : > { %1129 = vrot.lane.b32.xlu0 %v3458_v2, %s2164_s14  ;;  %738 = vrot.lane.b32.xlu1 %v2985_v4, %s2164_s14 }
 0x210   : > { %1529 = vmatmul.mubr.f32.gmra.mxu1 %v1381_v60 }
 0x211   : > { %v931_v45 = vpop.permute.xlu1 %930  ;;  %v1320_v23 = vpop.permute.xlu0 %1319 }
 0x212   : > { %974 = vst.msk [vmem:[#allocation2 + $0x50] sm:$0xff] %vm968_vm2, %v931_v45  ;;  %1362 = vst.msk [vmem:[#allocation2 + $0x58] sm:$0xff] %vm968_vm2, %v1320_v23 }
 0x213   : > { %1234 = vrot.lane.b32.xlu0 %v2988_v15, %s2165_s21  ;;  %844 = vrot.lane.b32.xlu1 %v2991_v54, %s2165_s21  ;;  %s1864_s21 = sshll.u32 %s3462_s25, 3 }
 0x214   : > { %s278_s26 = scalar_lea.vmem %s3389_s7, %s1864_s21 }
 0x215   : > { %v721_v46 = vpop.permute.xlu1 %720  ;;  %v1112_v31 = vpop.permute.xlu0 %1111 }
 0x216   : > { %763 = vst.msk [vmem:[#allocation2 + $0x60] sm:$0xff] %vm756_vm0, %v721_v46  ;;  %1153 = vst.msk [vmem:[#allocation2 + $0x68] sm:$0xff] %vm756_vm0, %v1112_v31 }
 0x217   : > { %1339 = vrot.lane.b32.xlu0 %v3004_v26, %s2166_s22  ;;  %950 = vrot.lane.b32.xlu1 %v3010_v49, %s2166_s22 }
 0x219   : > { %v827_v4 = vpop.permute.xlu1 %826  ;;  %v1217_v21 = vpop.permute.xlu0 %1216  ;;  %v1384_v38 = vld [vmem:[#allocation2 + $0x58] sm:$0xff]  ;;  %v1383_v24 = vld [vmem:[#allocation2 + $0x50] sm:$0xff] }
 0x21a   : > { %869 = vst.msk [vmem:[#allocation2 + $0x60] sm:$0xff] %vm862_vm1, %v827_v4  ;;  %1258 = vst.msk [vmem:[#allocation2 + $0x68] sm:$0xff] %vm862_vm1, %v1217_v21  ;;  %1533 = vmatprep.mubr.f32.mxu1 %v1384_v38 }
 0x21b   : > { %1534 = vmatmul.mubr.f32.gmra.mxu1 %v1383_v24 }
 0x21d   : > { %v933_v54 = vpop.permute.xlu1 %932  ;;  %v1322_v15 = vpop.permute.xlu0 %1321 }
 0x21e   : > { %975 = vst.msk [vmem:[#allocation2 + $0x60] sm:$0xff] %vm968_vm2, %v933_v54  ;;  %1363 = vst.msk [vmem:[#allocation2 + $0x68] sm:$0xff] %vm968_vm2, %v1322_v15 }
 0x221   : > { %v723_v26 = vpop.permute.xlu1 %722  ;;  %v1114_v50 = vpop.permute.xlu0 %1113 }
 0x222   : > { %764 = vst.msk [vmem:[#allocation2 + $0x70] sm:$0xff] %vm756_vm0, %v723_v26  ;;  %1154 = vst.msk [vmem:[#allocation2 + $0x78] sm:$0xff] %vm756_vm0, %v1114_v50 }
 0x225   : > { %v829_v49 = vpop.permute.xlu1 %828  ;;  %v1219_v42 = vpop.permute.xlu0 %1218  ;;  %v1386_v43 = vld [vmem:[#allocation2 + $0x68] sm:$0xff]  ;;  %v1385_v10 = vld [vmem:[#allocation2 + $0x60] sm:$0xff] }
 0x226   : > { %870 = vst.msk [vmem:[#allocation2 + $0x70] sm:$0xff] %vm862_vm1, %v829_v49  ;;  %1259 = vst.msk [vmem:[#allocation2 + $0x78] sm:$0xff] %vm862_vm1, %v1219_v42  ;;  %1538 = vmatprep.mubr.f32.mxu1 %v1386_v43 }
 0x227   : > { %1539 = vmatmul.mubr.f32.gmra.mxu1 %v1385_v10 }
 0x229   : > { %v935_v20 = vpop.permute.xlu1 %934  ;;  %v1324_v32 = vpop.permute.xlu0 %1323 }
 0x22a   : > { %976 = vst.msk [vmem:[#allocation2 + $0x70] sm:$0xff] %vm968_vm2, %v935_v20  ;;  %1364 = vst.msk [vmem:[#allocation2 + $0x78] sm:$0xff] %vm968_vm2, %v1324_v32 }
 0x22d   : > { %v725_v57 = vpop.permute.xlu1 %724  ;;  %v1116_v3 = vpop.permute.xlu0 %1115 }
 0x22e   : > { %765 = vst.msk [vmem:[#allocation2 + $0x80] sm:$0xff] %vm756_vm0, %v725_v57  ;;  %1155 = vst.msk [vmem:[#allocation2 + $0x88] sm:$0xff] %vm756_vm0, %v1116_v3 }
 0x231   : > { %v831_v25 = vpop.permute.xlu1 %830  ;;  %v1221_v11 = vpop.permute.xlu0 %1220  ;;  %v1388_v16 = vld [vmem:[#allocation2 + $0x78] sm:$0xff]  ;;  %v1387_v36 = vld [vmem:[#allocation2 + $0x70] sm:$0xff] }
 0x232   : > { %871 = vst.msk [vmem:[#allocation2 + $0x80] sm:$0xff] %vm862_vm1, %v831_v25  ;;  %1260 = vst.msk [vmem:[#allocation2 + $0x88] sm:$0xff] %vm862_vm1, %v1221_v11  ;;  %1543 = vmatprep.mubr.f32.mxu1 %v1388_v16  ;;  %v2167_v25 = vmov 0.0   ;;  %v1694_v11 = vld [vmem:[%s3387_s5 + $0x78] sm:$0xff]  ;;  %v1693_v16 = vld [vmem:[%s3387_s5 + $0x70] sm:$0xff] }
 0x233   : > { %1544 = vmatmul.mubr.f32.gmra.mxu1 %v1387_v36  ;;  %2098 = vmatprep.subr.mxu0 %v2167_v25  ;;  %v1692_v36 = vld [vmem:[%s3387_s5 + $0x68] sm:$0xff] }
 0x234   : > { %2099 = vmatpush3.msra.mxu0 %v1694_v11  ;;  %2130 = vmatprep.mubr.msk.f32.mxu0 %vm2168_vm3, %v2167_v25 }
 0x235   : > { %v937_v63 = vpop.permute.xlu1 %936  ;;  %v1326_v19 = vpop.permute.xlu0 %1325  ;;  %2100 = vmatprep.subr.mxu0 %v2167_v25 }
 0x236   : > { %977 = vst.msk [vmem:[#allocation2 + $0x80] sm:$0xff] %vm968_vm2, %v937_v63  ;;  %1365 = vst.msk [vmem:[#allocation2 + $0x88] sm:$0xff] %vm968_vm2, %v1326_v19  ;;  %2101 = vmatpush3.msra.mxu0 %v1693_v16  ;;  %v1691_v63 = vld [vmem:[%s3387_s5 + $0x60] sm:$0xff]  ;;  %v1690_v19 = vld [vmem:[%s3387_s5 + $0x58] sm:$0xff] }
 0x237   : > { %2102 = vmatprep.subr.mxu0 %v2167_v25 }
 0x238   : > { %2103 = vmatpush3.msra.mxu0 %v1692_v36 }
 0x239   : > { %v727_v12 = vpop.permute.xlu1 %726  ;;  %v1118_v18 = vpop.permute.xlu0 %1117  ;;  %2104 = vmatprep.subr.mxu0 %v2167_v25 }
 0x23a   : > { %766 = vst.msk [vmem:[#allocation2 + $0x90] sm:$0xff] %vm756_vm0, %v727_v12  ;;  %1156 = vst.msk [vmem:[#allocation2 + $0x98] sm:$0xff] %vm756_vm0, %v1118_v18  ;;  %2105 = vmatpush3.msra.mxu0 %v1691_v63  ;;  %v1689_v12 = vld [vmem:[%s3387_s5 + $0x50] sm:$0xff]  ;;  %v1688_v18 = vld [vmem:[%s3387_s5 + $0x48] sm:$0xff] }
 0x23b   : > { %2106 = vmatprep.subr.mxu0 %v2167_v25 }
 0x23c   : > { %2107 = vmatpush3.msra.mxu0 %v1690_v19 }
 0x23d   : > { %v833_v37 = vpop.permute.xlu1 %832  ;;  %v1223_v41 = vpop.permute.xlu0 %1222  ;;  %v1390_v62 = vld [vmem:[#allocation2 + $0x88] sm:$0xff]  ;;  %v1389_v47 = vld [vmem:[#allocation2 + $0x80] sm:$0xff]  ;;  %2108 = vmatprep.subr.mxu0 %v2167_v25 }
 0x23e   : > { %872 = vst.msk [vmem:[#allocation2 + $0x90] sm:$0xff] %vm862_vm1, %v833_v37  ;;  %1261 = vst.msk [vmem:[#allocation2 + $0x98] sm:$0xff] %vm862_vm1, %v1223_v41  ;;  %1548 = vmatprep.mubr.f32.mxu1 %v1390_v62  ;;  %2109 = vmatpush3.msra.mxu0 %v1689_v12  ;;  %v1687_v37 = vld [vmem:[%s3387_s5 + $0x40] sm:$0xff]  ;;  %v1686_v41 = vld [vmem:[%s3387_s5 + $0x38] sm:$0xff] }
 0x23f   : > { %1549 = vmatmul.mubr.f32.gmra.mxu1 %v1389_v47  ;;  %2110 = vmatprep.subr.mxu0 %v2167_v25  ;;  %v1685_v62 = vld [vmem:[%s3387_s5 + $0x30] sm:$0xff]  ;;  %v1684_v47 = vld [vmem:[%s3387_s5 + $0x28] sm:$0xff] }
 0x240   : > { %2111 = vmatpush3.msra.mxu0 %v1688_v18 }
 0x241   : > { %v939_v52 = vpop.permute.xlu1 %938  ;;  %v1328_v34 = vpop.permute.xlu0 %1327  ;;  %2112 = vmatprep.subr.mxu0 %v2167_v25 }
 0x242   : > { %978 = vst.msk [vmem:[#allocation2 + $0x90] sm:$0xff] %vm968_vm2, %v939_v52  ;;  %1366 = vst.msk [vmem:[#allocation2 + $0x98] sm:$0xff] %vm968_vm2, %v1328_v34  ;;  %2113 = vmatpush3.msra.mxu0 %v1687_v37  ;;  %v1683_v52 = vld [vmem:[%s3387_s5 + $0x20] sm:$0xff]  ;;  %v1682_v34 = vld [vmem:[%s3387_s5 + $0x18] sm:$0xff] }
 0x243   : > { %2114 = vmatprep.subr.mxu0 %v2167_v25 }
 0x244   : > { %2115 = vmatpush3.msra.mxu0 %v1686_v41 }
 0x245   : > { %v729_v27 = vpop.permute.xlu1 %728  ;;  %v1120_v44 = vpop.permute.xlu0 %1119  ;;  %2116 = vmatprep.subr.mxu0 %v2167_v25 }
 0x246   : > { %767 = vst.msk [vmem:[#allocation2 + $0xa0] sm:$0xff] %vm756_vm0, %v729_v27  ;;  %1157 = vst.msk [vmem:[#allocation2 + $0xa8] sm:$0xff] %vm756_vm0, %v1120_v44  ;;  %2117 = vmatpush3.msra.mxu0 %v1685_v62  ;;  %v1681_v44 = vld [vmem:[%s3387_s5 + $0x10] sm:$0xff] }
 0x247   : > { %2118 = vmatprep.subr.mxu0 %v2167_v25 }
 0x248   : > { %2119 = vmatpush3.msra.mxu0 %v1684_v47 }
 0x249   : > { %v835_v40 = vpop.permute.xlu1 %834  ;;  %v1225_v35 = vpop.permute.xlu0 %1224  ;;  %v1392_v8 = vld [vmem:[#allocation2 + $0x98] sm:$0xff]  ;;  %v1391_v39 = vld [vmem:[#allocation2 + $0x90] sm:$0xff]  ;;  %2120 = vmatprep.subr.mxu0 %v2167_v25 }
 0x24a   : > { %873 = vst.msk [vmem:[#allocation2 + $0xa0] sm:$0xff] %vm862_vm1, %v835_v40  ;;  %1262 = vst.msk [vmem:[#allocation2 + $0xa8] sm:$0xff] %vm862_vm1, %v1225_v35  ;;  %1553 = vmatprep.mubr.f32.mxu1 %v1392_v8  ;;  %2121 = vmatpush3.msra.mxu0 %v1683_v52  ;;  %v1680_v40 = vld [vmem:[%s3387_s5 + $0x8] sm:$0xff]  ;;  %v1679_v8 = vld [vmem:[%s3387_s5] sm:$0xff] }
 0x24b   : > { %1554 = vmatmul.mubr.f32.gmra.mxu1 %v1391_v39  ;;  %2122 = vmatprep.subr.mxu0 %v2167_v25 }
 0x24c   : > { %2123 = vmatpush3.msra.mxu0 %v1682_v34 }
 0x24d   : > { %v941_v9 = vpop.permute.xlu1 %940  ;;  %v1330_v17 = vpop.permute.xlu0 %1329  ;;  %2124 = vmatprep.subr.mxu0 %v2167_v25 }
 0x24e   : > { %979 = vst.msk [vmem:[#allocation2 + $0xa0] sm:$0xff] %vm968_vm2, %v941_v9  ;;  %1367 = vst.msk [vmem:[#allocation2 + $0xa8] sm:$0xff] %vm968_vm2, %v1330_v17  ;;  %2125 = vmatpush3.msra.mxu0 %v1681_v44 }
 0x24f   : > { %2126 = vmatprep.subr.mxu0 %v2167_v25 }
 0x250   : > { %2127 = vmatpush3.msra.mxu0 %v1680_v40 }
 0x251   : > { %v731_v13 = vpop.permute.xlu1 %730  ;;  %v1122_v14 = vpop.permute.xlu0 %1121  ;;  %2128 = vmatprep.subr.mxu0 %v2167_v25 }
 0x252   : > { %768 = vst.msk [vmem:[#allocation2 + $0xb0] sm:$0xff] %vm756_vm0, %v731_v13  ;;  %1158 = vst.msk [vmem:[#allocation2 + $0xb8] sm:$0xff] %vm756_vm0, %v1122_v14  ;;  %2129 = vmatpush3.msra.mxu0 %v1679_v8 }
 0x255   : > { %v837_v51 = vpop.permute.xlu1 %836  ;;  %v1227_v53 = vpop.permute.xlu0 %1226  ;;  %v1394_v30 = vld [vmem:[#allocation2 + $0xa8] sm:$0xff]  ;;  %v1393_v6 = vld [vmem:[#allocation2 + $0xa0] sm:$0xff] }
 0x256   : > { %874 = vst.msk [vmem:[#allocation2 + $0xb0] sm:$0xff] %vm862_vm1, %v837_v51  ;;  %1263 = vst.msk [vmem:[#allocation2 + $0xb8] sm:$0xff] %vm862_vm1, %v1227_v53  ;;  %1558 = vmatprep.mubr.f32.mxu1 %v1394_v30 }
 0x257   : > { %1559 = vmatmul.mubr.f32.gmra.mxu1 %v1393_v6 }
 0x259   : > { %v943_v7 = vpop.permute.xlu1 %942  ;;  %v1332_v55 = vpop.permute.xlu0 %1331 }
 0x25a   : > { %980 = vst.msk [vmem:[#allocation2 + $0xb0] sm:$0xff] %vm968_vm2, %v943_v7  ;;  %1368 = vst.msk [vmem:[#allocation2 + $0xb8] sm:$0xff] %vm968_vm2, %v1332_v55 }
 0x25d   : > { %v733_v5 = vpop.permute.xlu1 %732  ;;  %v1124_v1 = vpop.permute.xlu0 %1123 }
 0x25e   : > { %769 = vst.msk [vmem:[#allocation2 + $0xc0] sm:$0xff] %vm756_vm0, %v733_v5  ;;  %1159 = vst.msk [vmem:[#allocation2 + $0xc8] sm:$0xff] %vm756_vm0, %v1124_v1 }
 0x261   : > { %v839_v0 = vpop.permute.xlu1 %838  ;;  %v1229_v28 = vpop.permute.xlu0 %1228  ;;  %v1396_v61 = vld [vmem:[#allocation2 + $0xb8] sm:$0xff]  ;;  %v1395_v48 = vld [vmem:[#allocation2 + $0xb0] sm:$0xff] }
 0x262   : > { %875 = vst.msk [vmem:[#allocation2 + $0xc0] sm:$0xff] %vm862_vm1, %v839_v0  ;;  %1264 = vst.msk [vmem:[#allocation2 + $0xc8] sm:$0xff] %vm862_vm1, %v1229_v28  ;;  %1563 = vmatprep.mubr.f32.mxu1 %v1396_v61 }
 0x263   : > { %1564 = vmatmul.mubr.f32.gmra.mxu1 %v1395_v48 }
 0x265   : > { %v945_v33 = vpop.permute.xlu1 %944  ;;  %v1334_v22 = vpop.permute.xlu0 %1333 }
 0x266   : > { %981 = vst.msk [vmem:[#allocation2 + $0xc0] sm:$0xff] %vm968_vm2, %v945_v33  ;;  %1369 = vst.msk [vmem:[#allocation2 + $0xc8] sm:$0xff] %vm968_vm2, %v1334_v22 }
 0x269   : > { %v735_v56 = vpop.permute.xlu1 %734  ;;  %v1126_v58 = vpop.permute.xlu0 %1125 }
 0x26a   : > { %770 = vst.msk [vmem:[#allocation2 + $0xd0] sm:$0xff] %vm756_vm0, %v735_v56  ;;  %1160 = vst.msk [vmem:[#allocation2 + $0xd8] sm:$0xff] %vm756_vm0, %v1126_v58 }
 0x26d   : > { %v841_v59 = vpop.permute.xlu1 %840  ;;  %v1231_v29 = vpop.permute.xlu0 %1230  ;;  %v1398_v60 = vld [vmem:[#allocation2 + $0xc8] sm:$0xff]  ;;  %v1397_v2 = vld [vmem:[#allocation2 + $0xc0] sm:$0xff] }
 0x26e   : > { %876 = vst.msk [vmem:[#allocation2 + $0xd0] sm:$0xff] %vm862_vm1, %v841_v59  ;;  %1265 = vst.msk [vmem:[#allocation2 + $0xd8] sm:$0xff] %vm862_vm1, %v1231_v29  ;;  %1568 = vmatprep.mubr.f32.mxu1 %v1398_v60 }
 0x26f   : > { %1569 = vmatmul.mubr.f32.gmra.mxu1 %v1397_v2 }
 0x271   : > { %v947_v45 = vpop.permute.xlu1 %946  ;;  %v1336_v23 = vpop.permute.xlu0 %1335 }
 0x272   : > { %982 = vst.msk [vmem:[#allocation2 + $0xd0] sm:$0xff] %vm968_vm2, %v947_v45  ;;  %1370 = vst.msk [vmem:[#allocation2 + $0xd8] sm:$0xff] %vm968_vm2, %v1336_v23 }
 0x275   : > { %v737_v46 = vpop.permute.xlu1 %736  ;;  %v1128_v31 = vpop.permute.xlu0 %1127 }
 0x276   : > { %771 = vst.msk [vmem:[#allocation2 + $0xe0] sm:$0xff] %vm756_vm0, %v737_v46  ;;  %1161 = vst.msk [vmem:[#allocation2 + $0xe8] sm:$0xff] %vm756_vm0, %v1128_v31 }
 0x279   : > { %v843_v4 = vpop.permute.xlu1 %842  ;;  %v1233_v21 = vpop.permute.xlu0 %1232  ;;  %v1400_v38 = vld [vmem:[#allocation2 + $0xd8] sm:$0xff]  ;;  %v1399_v24 = vld [vmem:[#allocation2 + $0xd0] sm:$0xff] }
 0x27a   : > { %877 = vst.msk [vmem:[#allocation2 + $0xe0] sm:$0xff] %vm862_vm1, %v843_v4  ;;  %1266 = vst.msk [vmem:[#allocation2 + $0xe8] sm:$0xff] %vm862_vm1, %v1233_v21  ;;  %1573 = vmatprep.mubr.f32.mxu1 %v1400_v38  ;;  %v3337_v21 = vld [vmem:[%s3385_s3] ss:$0 sm:$0xff] }
 0x27b   : > { %1574 = vmatmul.mubr.f32.gmra.mxu1 %v1399_v24 }
 0x27d   : > { %v949_v54 = vpop.permute.xlu1 %948  ;;  %v1338_v15 = vpop.permute.xlu0 %1337 }
 0x27e   : > { %983 = vst.msk [vmem:[#allocation2 + $0xe0] sm:$0xff] %vm968_vm2, %v949_v54  ;;  %1371 = vst.msk [vmem:[#allocation2 + $0xe8] sm:$0xff] %vm968_vm2, %v1338_v15 }
 0x281   : > { %v739_v26 = vpop.permute.xlu1 %738  ;;  %v1130_v50 = vpop.permute.xlu0 %1129 }
 0x282   : > { %772 = vst.msk [vmem:[#allocation2 + $0xf0] sm:$0xff] %vm756_vm0, %v739_v26  ;;  %1162 = vst.msk [vmem:[#allocation2 + $0xf8] sm:$0xff] %vm756_vm0, %v1130_v50 }
 0x285   : > { %v845_v49 = vpop.permute.xlu1 %844  ;;  %v1235_v42 = vpop.permute.xlu0 %1234  ;;  %v1402_v43 = vld [vmem:[#allocation2 + $0xe8] sm:$0xff]  ;;  %v1401_v10 = vld [vmem:[#allocation2 + $0xe0] sm:$0xff] }
 0x286   : > { %878 = vst.msk [vmem:[#allocation2 + $0xf0] sm:$0xff] %vm862_vm1, %v845_v49  ;;  %1267 = vst.msk [vmem:[#allocation2 + $0xf8] sm:$0xff] %vm862_vm1, %v1235_v42  ;;  %1578 = vmatprep.mubr.f32.mxu1 %v1402_v43 }
 0x287   : > { %1579 = vmatmul.mubr.f32.gmra.mxu1 %v1401_v10 }
 0x289   : > { %v951_v20 = vpop.permute.xlu1 %950  ;;  %v1340_v32 = vpop.permute.xlu0 %1339 }
 0x28a   : > { %984 = vst.msk [vmem:[#allocation2 + $0xf0] sm:$0xff] %vm968_vm2, %v951_v20  ;;  %1372 = vst.msk [vmem:[#allocation2 + $0xf8] sm:$0xff] %vm968_vm2, %v1340_v32 }
 0x291   : > { %v1404_v57 = vld [vmem:[#allocation2 + $0xf8] sm:$0xff]  ;;  %v1403_v3 = vld [vmem:[#allocation2 + $0xf0] sm:$0xff] }
 0x292   : > { %1583 = vmatprep.mubr.f32.mxu1 %v1404_v57 }
 0x293   : > { %1584 = vmatmul.mubr.f32.gmra.mxu1 %v1403_v3 }
 0x2a0   : > { %v1965_v27 = vpop.f32.mrf.mxu1 }
 0x2a2   : > { %v1966_v35 = vpop.f32.mrf.mxu1 }
 0x2a3   : > { %v1967_v15 = vadd.f32 %v1966_v35, %v1965_v27  ;;  %v3355_v27 = vld [vmem:[%s3386_s4 + $0x8] sm:$0xff] }
 0x2a5   : > { %v1511_v36 = vadd.f32 %v1967_v15, %v3337_v21 }
 0x2a7   : > { %v1589_v8 = vmax.f32 %v1511_v36, 0.0 }
 0x2ac   : > { %v1968_v39 = vpop.f32.mrf.mxu1 }
 0x2ae   : > { %v1969_v9 = vpop.f32.mrf.mxu1 }
 0x2af   : > { %v1970_v46 = vadd.f32 %v1969_v9, %v1968_v39 }
 0x2b1   : > { %v1516_v20 = vadd.f32 %v1970_v46, %v3337_v21 }
 0x2b3   : > { %v1590_v62 = vmax.f32 %v1516_v20, 0.0 }
 0x2b8   : > { %v1971_v17 = vpop.f32.mrf.mxu1 }
 0x2ba   : > { %v1972_v13 = vpop.f32.mrf.mxu1 }
 0x2bb   : > { %v1973_v31 = vadd.f32 %v1972_v13, %v1971_v17  ;;  %v1605_v13 = vld [vmem:[%s3386_s4] sm:$0xff] }
 0x2bd   : > { %v1521_v32 = vadd.f32 %v1973_v31, %v3337_v21 }
 0x2bf   : > { %v1591_v47 = vmax.f32 %v1521_v32, 0.0 }
 0x2c4   : > { %v1974_v14 = vpop.f32.mrf.mxu1 }
 0x2c6   : > { %v1975_v51 = vpop.f32.mrf.mxu1 }
 0x2c7   : > { %v1976_v2 = vadd.f32 %v1975_v51, %v1974_v14 }
 0x2c9   : > { %v1526_v26 = vadd.f32 %v1976_v2, %v3337_v21 }
 0x2cb   : > { %v1592_v63 = vmax.f32 %v1526_v26, 0.0 }
 0x2cd   : > { %v1610_v39 = vmul.f32 %v3355_v27, %v1592_v63 }
 0x2d0   : > { %v1977_v53 = vpop.f32.mrf.mxu1 }
 0x2d2   : > { %v1978_v30 = vpop.f32.mrf.mxu1 }
 0x2d3   : > { %v1979_v38 = vadd.f32 %v1978_v30, %v1977_v53  ;;  %v1608_v30 = vmul.f32 %v3355_v27, %v1590_v62 }
 0x2d5   : > { %v1531_v25 = vadd.f32 %v1979_v38, %v3337_v21 }
 0x2d7   : > { %v1593_v44 = vmax.f32 %v1531_v25, 0.0 }
 0x2db   : > { %v1980_v6 = vpop.f32.mrf.mxu1 }
 0x2dd   : > { %v1981_v7 = vpop.f32.mrf.mxu1 }
 0x2de   : > { %v1982_v45 = vadd.f32 %v1981_v7, %v1980_v6  ;;  %v1609_v6 = vmul.f32 %v1605_v13, %v1591_v47 }
 0x2e0   : > { %v1536_v42 = vadd.f32 %v1982_v45, %v3337_v21 }
 0x2e2   : > { %v1594_v18 = vmax.f32 %v1536_v42, 0.0 }
 0x2e4   : > { %v1612_v14 = vmul.f32 %v3355_v27, %v1594_v18 }
 0x2e7   : > { %v1983_v55 = vpop.f32.mrf.mxu1 }
 0x2e9   : > { %v1984_v5 = vpop.f32.mrf.mxu1 }
 0x2ea   : > { %v1985_v50 = vadd.f32 %v1984_v5, %v1983_v55  ;;  %v1611_v5 = vmul.f32 %v1605_v13, %v1593_v44 }
 0x2ec   : > { %v1541_v19 = vadd.f32 %v1985_v50, %v3337_v21 }
 0x2ee   : > { %v1595_v9 = vmax.f32 %v1541_v19, 0.0 }
 0x2f3   : > { %v1986_v1 = vpop.f32.mrf.mxu1 }
 0x2f5   : > { %v1987_v0 = vpop.f32.mrf.mxu1 }
 0x2f6   : > { %v1988_v4 = vadd.f32 %v1987_v0, %v1986_v1 }
 0x2f8   : > { %v1546_v57 = vadd.f32 %v1988_v4, %v3337_v21 }
 0x2fa   : > { %v1596_v52 = vmax.f32 %v1546_v57, 0.0 }
 0x2fc   : > { %v1614_v7 = vmul.f32 %v3355_v27, %v1596_v52 }
 0x2ff   : > { %v1989_v28 = vpop.f32.mrf.mxu1 }
 0x301   : > { %v1990_v61 = vpop.f32.mrf.mxu1 }
 0x302   : > { %v1991_v43 = vadd.f32 %v1990_v61, %v1989_v28  ;;  %v1607_v61 = vmul.f32 %v1605_v13, %v1589_v8 }
 0x304   : > { %v1551_v37 = vadd.f32 %v1991_v43, %v3337_v21 }
 0x306   : > { %v1597_v51 = vmax.f32 %v1551_v37, 0.0 }
 0x30b   : > { %v1992_v48 = vpop.f32.mrf.mxu1 }
 0x30d   : > { %v1993_v33 = vpop.f32.mrf.mxu1 }
 0x30e   : > { %v1994_v24 = vadd.f32 %v1993_v33, %v1992_v48  ;;  %v1630_v48 = vmax.f32 %v1609_v6, %v1610_v39  ;;  %v1613_v33 = vmul.f32 %v1605_v13, %v1595_v9 }
 0x310   : > { %v1556_v11 = vadd.f32 %v1994_v24, %v3337_v21  ;;  %v1631_v31 = vrot.slane %v1630_v48, 4 }
 0x312   : > { %v1598_v40 = vmax.f32 %v1556_v11, 0.0 }
 0x314   : > { %v1616_v1 = vmul.f32 %v3355_v27, %v1598_v40 }
 0x317   : > { %v1995_v22 = vpop.f32.mrf.mxu1 }
 0x319   : > { %v1996_v56 = vpop.f32.mrf.mxu1 }
 0x31a   : > { %v1997_v3 = vadd.f32 %v1996_v56, %v1995_v22  ;;  %v1637_v56 = vmax.f32 %v1611_v5, %v1612_v14 }
 0x31c   : > { %v1561_v34 = vadd.f32 %v1997_v3, %v3337_v21  ;;  %v1638_v38 = vrot.slane %v1637_v56, 4 }
 0x31e   : > { %v1599_v55 = vmax.f32 %v1561_v34, 0.0  ;;  %v1639_v43 = vmax.f32 %v1637_v56, %v1638_v38 }
 0x320   : > { %v1617_v2 = vmul.f32 %v1605_v13, %v1599_v55  ;;  %v1640_v19 = vrot.slane %v1639_v43, 2 }
 0x322   : > { %v1641_v40 = vmax.f32 %v1639_v43, %v1640_v19 }
 0x323   : > { %v1998_v58 = vpop.f32.mrf.mxu1 }
 0x324   : > { %v1642_v6 = vrot.slane %v1641_v40, 1 }
 0x325   : > { %v1999_v59 = vpop.f32.mrf.mxu1 }
 0x326   : > { %v2000_v49 = vadd.f32 %v1999_v59, %v1998_v58  ;;  %v1615_v58 = vmul.f32 %v1605_v13, %v1597_v51 }
 0x328   : > { %v1566_v12 = vadd.f32 %v2000_v49, %v3337_v21  ;;  %v1651_v45 = vmax.f32 %v1615_v58, %v1616_v1  ;;  %v1632_v49 = vmax.f32 %v1630_v48, %v1631_v31  ;;  %v1643_v48 = vmax.f32 %v1641_v40, %v1642_v6 }
 0x32a   : > { %v1600_v17 = vmax.f32 %v1566_v12, 0.0  ;;  %v1652_v50 = vrot.slane %v1651_v45, 4 }
 0x32c   : > { %v1618_v22 = vmul.f32 %v3355_v27, %v1600_v17  ;;  %v1653_v25 = vmax.f32 %v1651_v45, %v1652_v50 }
 0x32e   : > { %v1658_v4 = vmax.f32 %v1617_v2, %v1618_v22  ;;  %v1654_v47 = vrot.slane %v1653_v25, 2 }
 0x32f   : > { %v2001_v29 = vpop.f32.mrf.mxu1 }
 0x330   : > { %v1659_v42 = vrot.slane %v1658_v4, 4  ;;  %v1655_v14 = vmax.f32 %v1653_v25, %v1654_v47 }
 0x331   : > { %v2002_v60 = vpop.f32.mrf.mxu1 }
 0x332   : > { %v2003_v16 = vadd.f32 %v2002_v60, %v2001_v29  ;;  %v1623_v29 = vmax.f32 %v1607_v61, %v1608_v30  ;;  %v1644_v60 = vmax.f32 %v1613_v33, %v1614_v7  ;;  %v1660_v36 = vmax.f32 %v1658_v4, %v1659_v42 }
 0x333   : > { %v1656_v1 = vrot.slane %v1655_v14, 1 }
 0x334   : > { %v1571_v35 = vadd.f32 %v2003_v16, %v3337_v21  ;;  %v1645_v15 = vrot.slane %v1644_v60, 4  ;;  %v1633_v16 = vrot.slane %v1632_v49, 2  ;;  %v1661_v34 = vrot.slane %v1660_v36, 2 }
 0x336   : > { %v1601_v0 = vmax.f32 %v1571_v35, 0.0  ;;  %v1646_v57 = vmax.f32 %v1644_v60, %v1645_v15  ;;  %v1634_v52 = vmax.f32 %v1632_v49, %v1633_v16 }
 0x338   : > { %v1647_v37 = vrot.slane %v1646_v57, 2  ;;  %v1635_v51 = vrot.slane %v1634_v52, 1 }
 0x33a   : > { %v1648_v39 = vmax.f32 %v1646_v57, %v1647_v37 }
 0x33b   : > { %v2004_v23 = vpop.f32.mrf.mxu1 }
 0x33c   : > { %v1649_v5 = vrot.slane %v1648_v39, 1 }
 0x33d   : > { %v2005_v54 = vpop.f32.mrf.mxu1 }
 0x33e   : > { %v2006_v10 = vadd.f32 %v2005_v54, %v2004_v23  ;;  %v1619_v23 = vmul.f32 %v1605_v13, %v1601_v0  ;;  %v1624_v54 = vrot.slane %v1623_v29, 4  ;;  %v1636_v0 = vmax.f32 %v1634_v52, %v1635_v51 }
 0x340   : > { %v1576_v41 = vadd.f32 %v2006_v10, %v3337_v21  ;;  %v1625_v32 = vmax.f32 %v1623_v29, %v1624_v54  ;;  %v1890_v54 = vld [vmem:[%s3388_s6] ss:$0 sm:$0xff] }
 0x342   : > { %v1602_v53 = vmax.f32 %v1576_v41, 0.0  ;;  %v1626_v18 = vrot.slane %v1625_v32, 2 }
 0x344   : > { %v1620_v59 = vmul.f32 %v3355_v27, %v1602_v53  ;;  %v1627_v8 = vmax.f32 %v1625_v32, %v1626_v18  ;;  %v1662_v53 = vmax.f32 %v1660_v36, %v1661_v34 }
 0x346   : > { %v1665_v24 = vmax.f32 %v1619_v23, %v1620_v59  ;;  %v1628_v55 = vrot.slane %v1627_v8, 1 }
 0x347   : > { %v2007_v28 = vpop.f32.mrf.mxu1 }
 0x348   : > { %v1666_v10 = vrot.slane %v1665_v24, 4  ;;  %v1629_v22 = vmax.f32 %v1627_v8, %v1628_v55 }
 0x349   : > { %v2008_v46 = vpop.f32.mrf.mxu1 }
 0x34a   : > { %v2009_v26 = vadd.f32 %v2008_v46, %v2007_v28  ;;  %v1667_v12 = vmax.f32 %v1665_v24, %v1666_v10  ;;  %v1663_v28 = vrot.slane %v1662_v53, 1  ;;  %v1711_v58 = vsel %vm1710_vm4, %v1636_v0, %v1629_v22 }
 0x34b   : > { %v1713_v2 = vsel %vm1712_vm5, %v1643_v48, %v1711_v58 }
 0x34c   : > { %v1581_v3 = vadd.f32 %v2009_v26, %v3337_v21  ;;  %v1668_v35 = vrot.slane %v1667_v12, 2  ;;  %v1664_v59 = vmax.f32 %v1662_v53, %v1663_v28 }
 0x34e   : > { %v1603_v41 = vmax.f32 %v1581_v3, 0.0  ;;  %v1669_v7 = vmax.f32 %v1667_v12, %v1668_v35 }
 0x350   : > { %v1621_v9 = vmul.f32 %v1605_v13, %v1603_v41  ;;  %v1670_v33 = vrot.slane %v1669_v7, 1  ;;  %v1650_v13 = vmax.f32 %v1648_v39, %v1649_v5 }
 0x352   : > { %v1671_v60 = vmax.f32 %v1669_v7, %v1670_v33  ;;  %v1715_v23 = vsel %vm1714_vm6, %v1650_v13, %v1713_v2 }
 0x353   : > { %v2010_v20 = vpop.f32.mrf.mxu1 }
 0x355   : > { %v2011_v11 = vpop.f32.mrf.mxu1 }
 0x356   : > { %v2012_v63 = vadd.f32 %v2011_v11, %v2010_v20 }
 0x358   : > { %v1586_v62 = vadd.f32 %v2012_v63, %v3337_v21 }
 0x35a   : > { %v1604_v44 = vmax.f32 %v1586_v62, 0.0 }
 0x35c   : > { %v1622_v17 = vmul.f32 %v3355_v27, %v1604_v44  ;;  %v1657_v27 = vmax.f32 %v1655_v14, %v1656_v1 }
 0x35e   : > { %v1672_v30 = vmax.f32 %v1621_v9, %v1622_v17  ;;  %v1717_v46 = vsel %vm1716_vm7, %v1657_v27, %v1715_v23 }
 0x35f   : > { %v1719_v4 = vsel %vm1718_vm8, %v1664_v59, %v1717_v46 }
 0x360   : > { %v1673_v21 = vrot.slane %v1672_v30, 4  ;;  %v1721_v38 = vsel %vm1720_vm9, %v1671_v60, %v1719_v4 }
 0x362   : > { %v1674_v61 = vmax.f32 %v1672_v30, %v1673_v21 }
 0x364   : > { %v1675_v56 = vrot.slane %v1674_v61, 2 }
 0x366   : > { %v1676_v29 = vmax.f32 %v1674_v61, %v1675_v56 }
 0x368   : > { %v1677_v45 = vrot.slane %v1676_v29, 1 }
 0x36a   : > { %v1678_v31 = vmax.f32 %v1676_v29, %v1677_v45 }
 0x36c   : > { %v1723_v24 = vsel %vm1722_vm10, %v1678_v31, %v1721_v38 }
 0x36d   : > { %2131 = vmatmul.mubr.f32.vlgmr.msra.gmra.mxu0 %v1723_v24 }
 0x42d   : > { %v1791_v15 = vpop.f32.mrf.mxu0 }
 0x42e   : > { %v1792_v26 = vadd.f32 %v1890_v54, %v1791_v15 }
 0x42f   : > { %v2132_v50 = vpop.f32.mrf.mxu0 }
 0x430   : > { %1795 = vmax.xlane.f32.xlu0 %v1792_v26 }
 0x4b9   : > { %v1796_v49 = vpop.xlane.xlu0 %1795 }
 0x4ba   : > { %v1797_v42 = vsub.f32 %v1792_v26, %v1796_v49 }
 0x4bc   : > { %v1798_v43 = vmul.f32 1.442695, %v1797_v42 }
 0x4be   : > { %2150 = vpow2.f32 %v1798_v43 }
 0x4cb   : > { %v2151_v10 = vpop.eup %2150 }
 0x4cc   : > { %1800 = vadd.xlane.f32.xlu1 %v2151_v10 }
 0x555   : > { %v1801_v20 = vpop.xlane.xlu1 %1800 }
 0x556   : > { %2152 = vrcp.f32 %v1801_v20 }
 0x563   : > { %v2153_v32 = vpop.eup %2152 }
 0x564   : > { %v1803_v57 = vmul.f32 %v2153_v32, %v2151_v10 }
 0x566   : > { %1804 = vst [vmem:[%s278_s26] sm:$0xff] %v1803_v57 }
 0x567 PF: > { %s17_s24 = sadd.s32 1, %s2160_s24  }
 0x568   : > { %p14_p5 = scmp.ge.s32.totalorder %s17_s24, 4  }
 0x56a   :  { %16 = sbr.rel (!%p14_p5) target bundleno = 1 (0x1), region = 78 }

</bundles_post_ra>
